<compile_context>
chip_gen: v6e
topology: v6e:2x2x1
jax: 0.10.0
libtpu: 0.0.40
codegen_flags: <defaults>
</compile_context>

<pallas_src>
import math

import jax
import jax.numpy as jnp
from jax.experimental import pallas as pl
from jax.experimental.pallas import tpu as pltpu

# ---------------- model config (matches the PyTorch module) ----------------
INPUT_DIM = 16
D_MODEL = 32
NHEAD = 4
NUM_LAYERS = 2
NUM_CLASSES = 10
DIM_FF = D_MODEL * 4
HEAD_DIM = D_MODEL // NHEAD
LN_EPS = 1e-5
MAX_LEN = 64          # pos-encoding table length (module uses 5000; 64 suffices for seq=8)
LANE_PAD = 128        # lane-dense width for the decoder output
PARAMS_PER_LAYER = 12


# ---------------- fused Pallas kernel ----------------
def _fused_transformer_kernel(*refs):
    # refs: [src, pe, emb_w, emb_b, dec_w_pad, dec_b_pad,
    #        (12 params per layer) * NUM_LAYERS, out_ref]
    src_ref, pe_ref, emb_w_ref, emb_b_ref, dec_w_ref, dec_b_ref = refs[:6]
    out_ref = refs[-1]
    layer_refs = refs[6:-1]

    scale = 1.0 / math.sqrt(HEAD_DIM)

    def layernorm(z, g, b):
        mu = jnp.mean(z, axis=-1, keepdims=True)
        var = jnp.mean(jnp.square(z - mu), axis=-1, keepdims=True)
        return (z - mu) * jax.lax.rsqrt(var + LN_EPS) * g + b

    # ---- input embedding + positional encoding: (S, D_MODEL) ----
    src = src_ref[0]                                                   # (S, INPUT_DIM)
    x = jnp.dot(src, emb_w_ref[...], preferred_element_type=jnp.float32) + emb_b_ref[...]
    x = x + pe_ref[...]

    # ---- encoder layers (static unroll; activations stay on-chip) ----
    for l in range(NUM_LAYERS):
        (in_w, in_b, out_w, out_b, w1, b1, w2, b2,
         ln1_g, ln1_b, ln2_g, ln2_b) = (
            r[...] for r in
            layer_refs[l * PARAMS_PER_LAYER:(l + 1) * PARAMS_PER_LAYER])

        # --- multi-head self attention (post-norm, matches nn.MultiheadAttention) ---
        qkv = jnp.dot(x, in_w, preferred_element_type=jnp.float32) + in_b   # (S, 3D)
        q = qkv[:, :D_MODEL] * scale          # fold 1/sqrt(Dh) into q
        k = qkv[:, D_MODEL:2 * D_MODEL]
        v = qkv[:, 2 * D_MODEL:]

        heads = []
        for h in range(NHEAD):
            sl = slice(h * HEAD_DIM, (h + 1) * HEAD_DIM)
            qh, kh, vh = q[:, sl], k[:, sl], v[:, sl]                       # (S, Dh)
            # q @ k^T without an explicit transpose (contract last dims)
            s = jax.lax.dot_general(qh, kh, (((1,), (1,)), ((), ())),
                                    preferred_element_type=jnp.float32)     # (S, S)
            s = s - jnp.max(s, axis=-1, keepdims=True)
            p = jnp.exp(s)
            p = p * pl.reciprocal(jnp.sum(p, axis=-1, keepdims=True), approx=True)
            heads.append(jnp.dot(p, vh, preferred_element_type=jnp.float32))
        attn = jnp.concatenate(heads, axis=-1)                              # (S, D)
        attn = jnp.dot(attn, out_w, preferred_element_type=jnp.float32) + out_b

        x = layernorm(x + attn, ln1_g, ln1_b)                               # norm1

        # --- feed forward (relu) ---
        hmid = jnp.maximum(
            jnp.dot(x, w1, preferred_element_type=jnp.float32) + b1, 0.0)   # (S, DIM_FF)
        ff = jnp.dot(hmid, w2, preferred_element_type=jnp.float32) + b2     # (S, D)
        x = layernorm(x + ff, ln2_g, ln2_b)                                 # norm2

    # ---- decoder on last sequence position (lane-padded to 128) ----
    last = x[-1:, :]                                                        # (1, D_MODEL)
    logits = jnp.dot(last, dec_w_ref[...],
                     preferred_element_type=jnp.float32) + dec_b_ref[...]   # (1, 128)
    out_ref[0] = logits


# ---------------- parameters (deterministic, matching PyTorch module shapes) ----------------
def make_pe(max_len, d_model):
    position = jnp.arange(max_len, dtype=jnp.float32)[:, None]
    div_term = jnp.exp(
        jnp.arange(0, d_model, 2, dtype=jnp.float32) * (-math.log(10000.0) / d_model)
    )
    pe = jnp.zeros((max_len, d_model), jnp.float32)
    pe = pe.at[:, 0::2].set(jnp.sin(position * div_term))
    pe = pe.at[:, 1::2].set(jnp.cos(position * div_term))
    return pe  # (max_len, d_model)


def init_params(key):
    def dense(k, fan_in, fan_out):
        bound = 1.0 / math.sqrt(fan_in)
        kw, kb = jax.random.split(k)
        w = jax.random.uniform(kw, (fan_in, fan_out), jnp.float32, -bound, bound)
        b = jax.random.uniform(kb, (1, fan_out), jnp.float32, -bound, bound)
        return w, b

    keys = jax.random.split(key, 2 + NUM_LAYERS)
    params = {}
    params["emb_w"], params["emb_b"] = dense(keys[0], INPUT_DIM, D_MODEL)
    dec_w, dec_b = dense(keys[1], D_MODEL, NUM_CLASSES)
    # lane-dense padded decoder weights (extra columns are zero; sliced off in wrapper)
    params["dec_w_p"] = jnp.pad(dec_w, ((0, 0), (0, LANE_PAD - NUM_CLASSES)))
    params["dec_b_p"] = jnp.pad(dec_b, ((0, 0), (0, LANE_PAD - NUM_CLASSES)))
    params["pe"] = make_pe(MAX_LEN, D_MODEL)

    layers = []
    for l in range(NUM_LAYERS):
        lk = jax.random.split(keys[2 + l], 4)
        in_w, in_b = dense(lk[0], D_MODEL, 3 * D_MODEL)     # MHA in_proj (stored transposed)
        out_w, out_b = dense(lk[1], D_MODEL, D_MODEL)       # MHA out_proj
        w1, b1 = dense(lk[2], D_MODEL, DIM_FF)              # linear1
        w2, b2 = dense(lk[3], DIM_FF, D_MODEL)              # linear2
        layers.append(
            dict(
                in_proj_w=in_w, in_proj_b=in_b,
                out_proj_w=out_w, out_proj_b=out_b,
                ffn_w1=w1, ffn_b1=b1, ffn_w2=w2, ffn_b2=b2,
                ln1_g=jnp.ones((1, D_MODEL), jnp.float32),
                ln1_b=jnp.zeros((1, D_MODEL), jnp.float32),
                ln2_g=jnp.ones((1, D_MODEL), jnp.float32),
                ln2_b=jnp.zeros((1, D_MODEL), jnp.float32),
            )
        )
    params["layers"] = layers
    return params


# ---------------- forward pass: one pallas_call ----------------
def transformer_forward(src, params):
    B, S, _ = src.shape
    pe_s = params["pe"][:S]                                  # (S, D_MODEL)

    inputs = [src, pe_s,
              params["emb_w"], params["emb_b"],
              params["dec_w_p"], params["dec_b_p"]]
    for layer in params["layers"]:
        inputs += [layer["in_proj_w"], layer["in_proj_b"],
                   layer["out_proj_w"], layer["out_proj_b"],
                   layer["ffn_w1"], layer["ffn_b1"],
                   layer["ffn_w2"], layer["ffn_b2"],
                   layer["ln1_g"], layer["ln1_b"],
                   layer["ln2_g"], layer["ln2_b"]]

    def full_spec(arr):
        nd = arr.ndim
        return pl.BlockSpec(arr.shape, lambda b, _nd=nd: (0,) * _nd)

    in_specs = [pl.BlockSpec((1, S, INPUT_DIM), lambda b: (b, 0, 0))]
    in_specs += [full_spec(a) for a in inputs[1:]]

    out = pl.pallas_call(
        _fused_transformer_kernel,
        out_shape=jax.ShapeDtypeStruct((B, 1, LANE_PAD), jnp.float32),
        grid=(B,),
        in_specs=in_specs,
        out_specs=pl.BlockSpec((1, 1, LANE_PAD), lambda b: (b, 0, 0)),
        compiler_params=pltpu.CompilerParams(
            dimension_semantics=("parallel",)),       # v7x: one batch element per TC
    )(*inputs)

    return out.reshape(B, LANE_PAD)[:, :NUM_CLASSES]


if __name__ == "__main__":
    key = jax.random.PRNGKey(0)
    pkey, xkey = jax.random.split(key)
    params = init_params(pkey)

    B, S = 2, 8
    src = jax.random.normal(xkey, (B, S, INPUT_DIM), jnp.float32)

    out = jax.jit(transformer_forward)(src, params)
    jax.block_until_ready(out)
    assert out.shape == (B, NUM_CLASSES)
    assert jnp.all(jnp.isfinite(out))
    print("KERNEL_OK")
</pallas_src>

<mosaic_0001>
module attributes {stable_mosaic.version = 11 : i64} {
  func.func @_fused_transformer_kernel(%arg0: i32, %arg1: memref<1x8x16xf32, #tpu.memory_space<vmem>>, %arg2: memref<8x32xf32, #tpu.memory_space<vmem>>, %arg3: memref<16x32xf32, #tpu.memory_space<vmem>>, %arg4: memref<1x32xf32, #tpu.memory_space<vmem>>, %arg5: memref<32x128xf32, #tpu.memory_space<vmem>>, %arg6: memref<1x128xf32, #tpu.memory_space<vmem>>, %arg7: memref<32x96xf32, #tpu.memory_space<vmem>>, %arg8: memref<1x96xf32, #tpu.memory_space<vmem>>, %arg9: memref<32x32xf32, #tpu.memory_space<vmem>>, %arg10: memref<1x32xf32, #tpu.memory_space<vmem>>, %arg11: memref<32x128xf32, #tpu.memory_space<vmem>>, %arg12: memref<1x128xf32, #tpu.memory_space<vmem>>, %arg13: memref<128x32xf32, #tpu.memory_space<vmem>>, %arg14: memref<1x32xf32, #tpu.memory_space<vmem>>, %arg15: memref<1x32xf32, #tpu.memory_space<vmem>>, %arg16: memref<1x32xf32, #tpu.memory_space<vmem>>, %arg17: memref<1x32xf32, #tpu.memory_space<vmem>>, %arg18: memref<1x32xf32, #tpu.memory_space<vmem>>, %arg19: memref<32x96xf32, #tpu.memory_space<vmem>>, %arg20: memref<1x96xf32, #tpu.memory_space<vmem>>, %arg21: memref<32x32xf32, #tpu.memory_space<vmem>>, %arg22: memref<1x32xf32, #tpu.memory_space<vmem>>, %arg23: memref<32x128xf32, #tpu.memory_space<vmem>>, %arg24: memref<1x128xf32, #tpu.memory_space<vmem>>, %arg25: memref<128x32xf32, #tpu.memory_space<vmem>>, %arg26: memref<1x32xf32, #tpu.memory_space<vmem>>, %arg27: memref<1x32xf32, #tpu.memory_space<vmem>>, %arg28: memref<1x32xf32, #tpu.memory_space<vmem>>, %arg29: memref<1x32xf32, #tpu.memory_space<vmem>>, %arg30: memref<1x32xf32, #tpu.memory_space<vmem>>, %arg31: memref<1x1x128xf32, #tpu.memory_space<vmem>>) attributes {dimension_semantics = [#tpu.dimension_semantics<parallel>], iteration_bounds = array<i64: 2>, scalar_prefetch = 0 : i64, scratch_operands = 0 : i64, tpu.core_type = #tpu.core_type<tc>, window_params = [{transform_indices = @transform_0, window_bounds = array<i64: 1, 8, 16>}, {pipeline_mode = #tpu.pipeline_mode<synchronous>, transform_indices = @transform_1, window_bounds = array<i64: 8, 32>}, {pipeline_mode = #tpu.pipeline_mode<synchronous>, transform_indices = @transform_2, window_bounds = array<i64: 16, 32>}, {pipeline_mode = #tpu.pipeline_mode<synchronous>, transform_indices = @transform_3, window_bounds = array<i64: 1, 32>}, {pipeline_mode = #tpu.pipeline_mode<synchronous>, transform_indices = @transform_4, window_bounds = array<i64: 32, 128>}, {pipeline_mode = #tpu.pipeline_mode<synchronous>, transform_indices = @transform_5, window_bounds = array<i64: 1, 128>}, {pipeline_mode = #tpu.pipeline_mode<synchronous>, transform_indices = @transform_6, window_bounds = array<i64: 32, 96>}, {pipeline_mode = #tpu.pipeline_mode<synchronous>, transform_indices = @transform_7, window_bounds = array<i64: 1, 96>}, {pipeline_mode = #tpu.pipeline_mode<synchronous>, transform_indices = @transform_8, window_bounds = array<i64: 32, 32>}, {pipeline_mode = #tpu.pipeline_mode<synchronous>, transform_indices = @transform_9, window_bounds = array<i64: 1, 32>}, {pipeline_mode = #tpu.pipeline_mode<synchronous>, transform_indices = @transform_10, window_bounds = array<i64: 32, 128>}, {pipeline_mode = #tpu.pipeline_mode<synchronous>, transform_indices = @transform_11, window_bounds = array<i64: 1, 128>}, {pipeline_mode = #tpu.pipeline_mode<synchronous>, transform_indices = @transform_12, window_bounds = array<i64: 128, 32>}, {pipeline_mode = #tpu.pipeline_mode<synchronous>, transform_indices = @transform_13, window_bounds = array<i64: 1, 32>}, {pipeline_mode = #tpu.pipeline_mode<synchronous>, transform_indices = @transform_14, window_bounds = array<i64: 1, 32>}, {pipeline_mode = #tpu.pipeline_mode<synchronous>, transform_indices = @transform_15, window_bounds = array<i64: 1, 32>}, {pipeline_mode = #tpu.pipeline_mode<synchronous>, transform_indices = @transform_16, window_bounds = array<i64: 1, 32>}, {pipeline_mode = #tpu.pipeline_mode<synchronous>, transform_indices = @transform_17, window_bounds = array<i64: 1, 32>}, {pipeline_mode = #tpu.pipeline_mode<synchronous>, transform_indices = @transform_18, window_bounds = array<i64: 32, 96>}, {pipeline_mode = #tpu.pipeline_mode<synchronous>, transform_indices = @transform_19, window_bounds = array<i64: 1, 96>}, {pipeline_mode = #tpu.pipeline_mode<synchronous>, transform_indices = @transform_20, window_bounds = array<i64: 32, 32>}, {pipeline_mode = #tpu.pipeline_mode<synchronous>, transform_indices = @transform_21, window_bounds = array<i64: 1, 32>}, {pipeline_mode = #tpu.pipeline_mode<synchronous>, transform_indices = @transform_22, window_bounds = array<i64: 32, 128>}, {pipeline_mode = #tpu.pipeline_mode<synchronous>, transform_indices = @transform_23, window_bounds = array<i64: 1, 128>}, {pipeline_mode = #tpu.pipeline_mode<synchronous>, transform_indices = @transform_24, window_bounds = array<i64: 128, 32>}, {pipeline_mode = #tpu.pipeline_mode<synchronous>, transform_indices = @transform_25, window_bounds = array<i64: 1, 32>}, {pipeline_mode = #tpu.pipeline_mode<synchronous>, transform_indices = @transform_26, window_bounds = array<i64: 1, 32>}, {pipeline_mode = #tpu.pipeline_mode<synchronous>, transform_indices = @transform_27, window_bounds = array<i64: 1, 32>}, {pipeline_mode = #tpu.pipeline_mode<synchronous>, transform_indices = @transform_28, window_bounds = array<i64: 1, 32>}, {pipeline_mode = #tpu.pipeline_mode<synchronous>, transform_indices = @transform_29, window_bounds = array<i64: 1, 32>}, {transform_indices = @transform_30, window_bounds = array<i64: 1, 1, 128>}]} {
    %c0 = arith.constant 0 : index
    %c0_0 = arith.constant 0 : index
    %c0_1 = arith.constant 0 : index
    %0 = vector.load %arg1[%c0, %c0_0, %c0_1] : memref<1x8x16xf32, #tpu.memory_space<vmem>>, vector<1x8x16xf32>
    %1 = vector.shape_cast %0 : vector<1x8x16xf32> to vector<8x16xf32>
    %c0_2 = arith.constant 0 : index
    %c0_3 = arith.constant 0 : index
    %2 = vector.load %arg3[%c0_2, %c0_3] : memref<16x32xf32, #tpu.memory_space<vmem>>, vector<16x32xf32>
    %cst = arith.constant dense<0.000000e+00> : vector<8x32xf32>
    %3 = tpu.matmul %1, %2, %cst {dimension_numbers = #tpu.dot_dimension_numbers<[1], [0], [0], [1], [0, 0, 1, 1], [], []>} : vector<8x16xf32>, vector<16x32xf32>, vector<8x32xf32> -> vector<8x32xf32>
    %c0_4 = arith.constant 0 : index
    %c0_5 = arith.constant 0 : index
    %4 = vector.load %arg4[%c0_4, %c0_5] : memref<1x32xf32, #tpu.memory_space<vmem>>, vector<1x32xf32>
    %5 = vector.broadcast %4 : vector<1x32xf32> to vector<8x32xf32>
    %6 = arith.addf %3, %5 : vector<8x32xf32>
    %c0_6 = arith.constant 0 : index
    %c0_7 = arith.constant 0 : index
    %7 = vector.load %arg2[%c0_6, %c0_7] : memref<8x32xf32, #tpu.memory_space<vmem>>, vector<8x32xf32>
    %8 = arith.addf %6, %7 : vector<8x32xf32>
    %c0_8 = arith.constant 0 : index
    %c0_9 = arith.constant 0 : index
    %9 = vector.load %arg7[%c0_8, %c0_9] : memref<32x96xf32, #tpu.memory_space<vmem>>, vector<32x96xf32>
    %c0_10 = arith.constant 0 : index
    %c0_11 = arith.constant 0 : index
    %10 = vector.load %arg8[%c0_10, %c0_11] : memref<1x96xf32, #tpu.memory_space<vmem>>, vector<1x96xf32>
    %c0_12 = arith.constant 0 : index
    %c0_13 = arith.constant 0 : index
    %11 = vector.load %arg9[%c0_12, %c0_13] : memref<32x32xf32, #tpu.memory_space<vmem>>, vector<32x32xf32>
    %c0_14 = arith.constant 0 : index
    %c0_15 = arith.constant 0 : index
    %12 = vector.load %arg10[%c0_14, %c0_15] : memref<1x32xf32, #tpu.memory_space<vmem>>, vector<1x32xf32>
    %c0_16 = arith.constant 0 : index
    %c0_17 = arith.constant 0 : index
    %13 = vector.load %arg11[%c0_16, %c0_17] : memref<32x128xf32, #tpu.memory_space<vmem>>, vector<32x128xf32>
    %c0_18 = arith.constant 0 : index
    %c0_19 = arith.constant 0 : index
    %14 = vector.load %arg12[%c0_18, %c0_19] : memref<1x128xf32, #tpu.memory_space<vmem>>, vector<1x128xf32>
    %c0_20 = arith.constant 0 : index
    %c0_21 = arith.constant 0 : index
    %15 = vector.load %arg13[%c0_20, %c0_21] : memref<128x32xf32, #tpu.memory_space<vmem>>, vector<128x32xf32>
    %c0_22 = arith.constant 0 : index
    %c0_23 = arith.constant 0 : index
    %16 = vector.load %arg14[%c0_22, %c0_23] : memref<1x32xf32, #tpu.memory_space<vmem>>, vector<1x32xf32>
    %c0_24 = arith.constant 0 : index
    %c0_25 = arith.constant 0 : index
    %17 = vector.load %arg15[%c0_24, %c0_25] : memref<1x32xf32, #tpu.memory_space<vmem>>, vector<1x32xf32>
    %c0_26 = arith.constant 0 : index
    %c0_27 = arith.constant 0 : index
    %18 = vector.load %arg16[%c0_26, %c0_27] : memref<1x32xf32, #tpu.memory_space<vmem>>, vector<1x32xf32>
    %c0_28 = arith.constant 0 : index
    %c0_29 = arith.constant 0 : index
    %19 = vector.load %arg17[%c0_28, %c0_29] : memref<1x32xf32, #tpu.memory_space<vmem>>, vector<1x32xf32>
    %c0_30 = arith.constant 0 : index
    %c0_31 = arith.constant 0 : index
    %20 = vector.load %arg18[%c0_30, %c0_31] : memref<1x32xf32, #tpu.memory_space<vmem>>, vector<1x32xf32>
    %cst_32 = arith.constant dense<0.000000e+00> : vector<8x96xf32>
    %21 = tpu.matmul %8, %9, %cst_32 {dimension_numbers = #tpu.dot_dimension_numbers<[1], [0], [0], [1], [0, 0, 1, 1], [], []>} : vector<8x32xf32>, vector<32x96xf32>, vector<8x96xf32> -> vector<8x96xf32>
    %22 = vector.broadcast %10 : vector<1x96xf32> to vector<8x96xf32>
    %23 = arith.addf %21, %22 : vector<8x96xf32>
    %24 = vector.extract_strided_slice %23 {offsets = [0, 0], sizes = [8, 32], strides = [1, 1]} : vector<8x96xf32> to vector<8x32xf32>
    %cst_33 = arith.constant 0.353553385 : f32
    %25 = vector.broadcast %cst_33 : f32 to vector<8x32xf32>
    %26 = arith.mulf %24, %25 : vector<8x32xf32>
    %27 = vector.extract_strided_slice %23 {offsets = [0, 32], sizes = [8, 32], strides = [1, 1]} : vector<8x96xf32> to vector<8x32xf32>
    %28 = vector.extract_strided_slice %23 {offsets = [0, 64], sizes = [8, 32], strides = [1, 1]} : vector<8x96xf32> to vector<8x32xf32>
    %29 = vector.extract_strided_slice %26 {offsets = [0, 0], sizes = [8, 8], strides = [1, 1]} : vector<8x32xf32> to vector<8x8xf32>
    %30 = vector.extract_strided_slice %27 {offsets = [0, 0], sizes = [8, 8], strides = [1, 1]} : vector<8x32xf32> to vector<8x8xf32>
    %31 = vector.extract_strided_slice %28 {offsets = [0, 0], sizes = [8, 8], strides = [1, 1]} : vector<8x32xf32> to vector<8x8xf32>
    %cst_34 = arith.constant dense<0.000000e+00> : vector<8x8xf32>
    %32 = tpu.matmul %29, %30, %cst_34 {dimension_numbers = #tpu.dot_dimension_numbers<[1], [1], [0], [0], [0, 0, 1, 0], [], []>} : vector<8x8xf32>, vector<8x8xf32>, vector<8x8xf32> -> vector<8x8xf32>
    %cst_35 = arith.constant dense<0xFF800000> : vector<8xf32>
    %33 = vector.multi_reduction <maximumf>, %32, %cst_35 [1] : vector<8x8xf32> to vector<8xf32>
    %34 = vector.shape_cast %33 : vector<8xf32> to vector<8x1xf32>
    %35 = vector.broadcast %34 : vector<8x1xf32> to vector<8x8xf32>
    %36 = arith.subf %32, %35 : vector<8x8xf32>
    %37 = math.exp %36 : vector<8x8xf32>
    %cst_36 = arith.constant dense<0.000000e+00> : vector<8xf32>
    %38 = vector.multi_reduction <add>, %37, %cst_36 [1] : vector<8x8xf32> to vector<8xf32>
    %39 = vector.shape_cast %38 : vector<8xf32> to vector<8x1xf32>
    %40 = tpu.reciprocal %39 {approx = true} : vector<8x1xf32> -> vector<8x1xf32>
    %41 = vector.broadcast %40 : vector<8x1xf32> to vector<8x8xf32>
    %42 = arith.mulf %37, %41 : vector<8x8xf32>
    %cst_37 = arith.constant dense<0.000000e+00> : vector<8x8xf32>
    %43 = tpu.matmul %42, %31, %cst_37 {dimension_numbers = #tpu.dot_dimension_numbers<[1], [0], [0], [1], [0, 0, 1, 1], [], []>} : vector<8x8xf32>, vector<8x8xf32>, vector<8x8xf32> -> vector<8x8xf32>
    %44 = vector.extract_strided_slice %26 {offsets = [0, 8], sizes = [8, 8], strides = [1, 1]} : vector<8x32xf32> to vector<8x8xf32>
    %45 = vector.extract_strided_slice %27 {offsets = [0, 8], sizes = [8, 8], strides = [1, 1]} : vector<8x32xf32> to vector<8x8xf32>
    %46 = vector.extract_strided_slice %28 {offsets = [0, 8], sizes = [8, 8], strides = [1, 1]} : vector<8x32xf32> to vector<8x8xf32>
    %cst_38 = arith.constant dense<0.000000e+00> : vector<8x8xf32>
    %47 = tpu.matmul %44, %45, %cst_38 {dimension_numbers = #tpu.dot_dimension_numbers<[1], [1], [0], [0], [0, 0, 1, 0], [], []>} : vector<8x8xf32>, vector<8x8xf32>, vector<8x8xf32> -> vector<8x8xf32>
    %cst_39 = arith.constant dense<0xFF800000> : vector<8xf32>
    %48 = vector.multi_reduction <maximumf>, %47, %cst_39 [1] : vector<8x8xf32> to vector<8xf32>
    %49 = vector.shape_cast %48 : vector<8xf32> to vector<8x1xf32>
    %50 = vector.broadcast %49 : vector<8x1xf32> to vector<8x8xf32>
    %51 = arith.subf %47, %50 : vector<8x8xf32>
    %52 = math.exp %51 : vector<8x8xf32>
    %cst_40 = arith.constant dense<0.000000e+00> : vector<8xf32>
    %53 = vector.multi_reduction <add>, %52, %cst_40 [1] : vector<8x8xf32> to vector<8xf32>
    %54 = vector.shape_cast %53 : vector<8xf32> to vector<8x1xf32>
    %55 = tpu.reciprocal %54 {approx = true} : vector<8x1xf32> -> vector<8x1xf32>
    %56 = vector.broadcast %55 : vector<8x1xf32> to vector<8x8xf32>
    %57 = arith.mulf %52, %56 : vector<8x8xf32>
    %cst_41 = arith.constant dense<0.000000e+00> : vector<8x8xf32>
    %58 = tpu.matmul %57, %46, %cst_41 {dimension_numbers = #tpu.dot_dimension_numbers<[1], [0], [0], [1], [0, 0, 1, 1], [], []>} : vector<8x8xf32>, vector<8x8xf32>, vector<8x8xf32> -> vector<8x8xf32>
    %59 = vector.extract_strided_slice %26 {offsets = [0, 16], sizes = [8, 8], strides = [1, 1]} : vector<8x32xf32> to vector<8x8xf32>
    %60 = vector.extract_strided_slice %27 {offsets = [0, 16], sizes = [8, 8], strides = [1, 1]} : vector<8x32xf32> to vector<8x8xf32>
    %61 = vector.extract_strided_slice %28 {offsets = [0, 16], sizes = [8, 8], strides = [1, 1]} : vector<8x32xf32> to vector<8x8xf32>
    %cst_42 = arith.constant dense<0.000000e+00> : vector<8x8xf32>
    %62 = tpu.matmul %59, %60, %cst_42 {dimension_numbers = #tpu.dot_dimension_numbers<[1], [1], [0], [0], [0, 0, 1, 0], [], []>} : vector<8x8xf32>, vector<8x8xf32>, vector<8x8xf32> -> vector<8x8xf32>
    %cst_43 = arith.constant dense<0xFF800000> : vector<8xf32>
    %63 = vector.multi_reduction <maximumf>, %62, %cst_43 [1] : vector<8x8xf32> to vector<8xf32>
    %64 = vector.shape_cast %63 : vector<8xf32> to vector<8x1xf32>
    %65 = vector.broadcast %64 : vector<8x1xf32> to vector<8x8xf32>
    %66 = arith.subf %62, %65 : vector<8x8xf32>
    %67 = math.exp %66 : vector<8x8xf32>
    %cst_44 = arith.constant dense<0.000000e+00> : vector<8xf32>
    %68 = vector.multi_reduction <add>, %67, %cst_44 [1] : vector<8x8xf32> to vector<8xf32>
    %69 = vector.shape_cast %68 : vector<8xf32> to vector<8x1xf32>
    %70 = tpu.reciprocal %69 {approx = true} : vector<8x1xf32> -> vector<8x1xf32>
    %71 = vector.broadcast %70 : vector<8x1xf32> to vector<8x8xf32>
    %72 = arith.mulf %67, %71 : vector<8x8xf32>
    %cst_45 = arith.constant dense<0.000000e+00> : vector<8x8xf32>
    %73 = tpu.matmul %72, %61, %cst_45 {dimension_numbers = #tpu.dot_dimension_numbers<[1], [0], [0], [1], [0, 0, 1, 1], [], []>} : vector<8x8xf32>, vector<8x8xf32>, vector<8x8xf32> -> vector<8x8xf32>
    %74 = vector.extract_strided_slice %26 {offsets = [0, 24], sizes = [8, 8], strides = [1, 1]} : vector<8x32xf32> to vector<8x8xf32>
    %75 = vector.extract_strided_slice %27 {offsets = [0, 24], sizes = [8, 8], strides = [1, 1]} : vector<8x32xf32> to vector<8x8xf32>
    %76 = vector.extract_strided_slice %28 {offsets = [0, 24], sizes = [8, 8], strides = [1, 1]} : vector<8x32xf32> to vector<8x8xf32>
    %cst_46 = arith.constant dense<0.000000e+00> : vector<8x8xf32>
    %77 = tpu.matmul %74, %75, %cst_46 {dimension_numbers = #tpu.dot_dimension_numbers<[1], [1], [0], [0], [0, 0, 1, 0], [], []>} : vector<8x8xf32>, vector<8x8xf32>, vector<8x8xf32> -> vector<8x8xf32>
    %cst_47 = arith.constant dense<0xFF800000> : vector<8xf32>
    %78 = vector.multi_reduction <maximumf>, %77, %cst_47 [1] : vector<8x8xf32> to vector<8xf32>
    %79 = vector.shape_cast %78 : vector<8xf32> to vector<8x1xf32>
    %80 = vector.broadcast %79 : vector<8x1xf32> to vector<8x8xf32>
    %81 = arith.subf %77, %80 : vector<8x8xf32>
    %82 = math.exp %81 : vector<8x8xf32>
    %cst_48 = arith.constant dense<0.000000e+00> : vector<8xf32>
    %83 = vector.multi_reduction <add>, %82, %cst_48 [1] : vector<8x8xf32> to vector<8xf32>
    %84 = vector.shape_cast %83 : vector<8xf32> to vector<8x1xf32>
    %85 = tpu.reciprocal %84 {approx = true} : vector<8x1xf32> -> vector<8x1xf32>
    %86 = vector.broadcast %85 : vector<8x1xf32> to vector<8x8xf32>
    %87 = arith.mulf %82, %86 : vector<8x8xf32>
    %cst_49 = arith.constant dense<0.000000e+00> : vector<8x8xf32>
    %88 = tpu.matmul %87, %76, %cst_49 {dimension_numbers = #tpu.dot_dimension_numbers<[1], [0], [0], [1], [0, 0, 1, 1], [], []>} : vector<8x8xf32>, vector<8x8xf32>, vector<8x8xf32> -> vector<8x8xf32>
    %89 = tpu.concatenate %43, %58, %73, %88 in 1 : vector<8x8xf32>, vector<8x8xf32>, vector<8x8xf32>, vector<8x8xf32> -> vector<8x32xf32>
    %cst_50 = arith.constant dense<0.000000e+00> : vector<8x32xf32>
    %90 = tpu.matmul %89, %11, %cst_50 {dimension_numbers = #tpu.dot_dimension_numbers<[1], [0], [0], [1], [0, 0, 1, 1], [], []>} : vector<8x32xf32>, vector<32x32xf32>, vector<8x32xf32> -> vector<8x32xf32>
    %91 = vector.broadcast %12 : vector<1x32xf32> to vector<8x32xf32>
    %92 = arith.addf %90, %91 : vector<8x32xf32>
    %93 = arith.addf %8, %92 : vector<8x32xf32>
    %cst_51 = arith.constant dense<0.000000e+00> : vector<8xf32>
    %94 = vector.multi_reduction <add>, %93, %cst_51 [1] : vector<8x32xf32> to vector<8xf32>
    %95 = vector.shape_cast %94 : vector<8xf32> to vector<8x1xf32>
    %cst_52 = arith.constant 3.200000e+01 : f32
    %96 = vector.broadcast %cst_52 : f32 to vector<8x1xf32>
    %97 = arith.divf %95, %96 : vector<8x1xf32>
    %98 = vector.broadcast %97 : vector<8x1xf32> to vector<8x32xf32>
    %99 = arith.subf %93, %98 : vector<8x32xf32>
    %100 = arith.mulf %99, %99 : vector<8x32xf32>
    %cst_53 = arith.constant dense<0.000000e+00> : vector<8xf32>
    %101 = vector.multi_reduction <add>, %100, %cst_53 [1] : vector<8x32xf32> to vector<8xf32>
    %102 = vector.shape_cast %101 : vector<8xf32> to vector<8x1xf32>
    %cst_54 = arith.constant 3.200000e+01 : f32
    %103 = vector.broadcast %cst_54 : f32 to vector<8x1xf32>
    %104 = arith.divf %102, %103 : vector<8x1xf32>
    %105 = vector.broadcast %97 : vector<8x1xf32> to vector<8x32xf32>
    %106 = arith.subf %93, %105 : vector<8x32xf32>
    %cst_55 = arith.constant 9.99999974E-6 : f32
    %107 = vector.broadcast %cst_55 : f32 to vector<8x1xf32>
    %108 = arith.addf %104, %107 : vector<8x1xf32>
    %109 = math.rsqrt %108 : vector<8x1xf32>
    %110 = vector.broadcast %109 : vector<8x1xf32> to vector<8x32xf32>
    %111 = arith.mulf %106, %110 : vector<8x32xf32>
    %112 = vector.broadcast %17 : vector<1x32xf32> to vector<8x32xf32>
    %113 = arith.mulf %111, %112 : vector<8x32xf32>
    %114 = vector.broadcast %18 : vector<1x32xf32> to vector<8x32xf32>
    %115 = arith.addf %113, %114 : vector<8x32xf32>
    %cst_56 = arith.constant dense<0.000000e+00> : vector<8x128xf32>
    %116 = tpu.matmul %115, %13, %cst_56 {dimension_numbers = #tpu.dot_dimension_numbers<[1], [0], [0], [1], [0, 0, 1, 1], [], []>} : vector<8x32xf32>, vector<32x128xf32>, vector<8x128xf32> -> vector<8x128xf32>
    %117 = vector.broadcast %14 : vector<1x128xf32> to vector<8x128xf32>
    %118 = arith.addf %116, %117 : vector<8x128xf32>
    %cst_57 = arith.constant 0.000000e+00 : f32
    %119 = vector.broadcast %cst_57 : f32 to vector<8x128xf32>
    %120 = arith.maximumf %118, %119 : vector<8x128xf32>
    %cst_58 = arith.constant dense<0.000000e+00> : vector<8x32xf32>
    %121 = tpu.matmul %120, %15, %cst_58 {dimension_numbers = #tpu.dot_dimension_numbers<[1], [0], [0], [1], [0, 0, 1, 1], [], []>} : vector<8x128xf32>, vector<128x32xf32>, vector<8x32xf32> -> vector<8x32xf32>
    %122 = vector.broadcast %16 : vector<1x32xf32> to vector<8x32xf32>
    %123 = arith.addf %121, %122 : vector<8x32xf32>
    %124 = arith.addf %115, %123 : vector<8x32xf32>
    %cst_59 = arith.constant dense<0.000000e+00> : vector<8xf32>
    %125 = vector.multi_reduction <add>, %124, %cst_59 [1] : vector<8x32xf32> to vector<8xf32>
    %126 = vector.shape_cast %125 : vector<8xf32> to vector<8x1xf32>
    %cst_60 = arith.constant 3.200000e+01 : f32
    %127 = vector.broadcast %cst_60 : f32 to vector<8x1xf32>
    %128 = arith.divf %126, %127 : vector<8x1xf32>
    %129 = vector.broadcast %128 : vector<8x1xf32> to vector<8x32xf32>
    %130 = arith.subf %124, %129 : vector<8x32xf32>
    %131 = arith.mulf %130, %130 : vector<8x32xf32>
    %cst_61 = arith.constant dense<0.000000e+00> : vector<8xf32>
    %132 = vector.multi_reduction <add>, %131, %cst_61 [1] : vector<8x32xf32> to vector<8xf32>
    %133 = vector.shape_cast %132 : vector<8xf32> to vector<8x1xf32>
    %cst_62 = arith.constant 3.200000e+01 : f32
    %134 = vector.broadcast %cst_62 : f32 to vector<8x1xf32>
    %135 = arith.divf %133, %134 : vector<8x1xf32>
    %136 = vector.broadcast %128 : vector<8x1xf32> to vector<8x32xf32>
    %137 = arith.subf %124, %136 : vector<8x32xf32>
    %cst_63 = arith.constant 9.99999974E-6 : f32
    %138 = vector.broadcast %cst_63 : f32 to vector<8x1xf32>
    %139 = arith.addf %135, %138 : vector<8x1xf32>
    %140 = math.rsqrt %139 : vector<8x1xf32>
    %141 = vector.broadcast %140 : vector<8x1xf32> to vector<8x32xf32>
    %142 = arith.mulf %137, %141 : vector<8x32xf32>
    %143 = vector.broadcast %19 : vector<1x32xf32> to vector<8x32xf32>
    %144 = arith.mulf %142, %143 : vector<8x32xf32>
    %145 = vector.broadcast %20 : vector<1x32xf32> to vector<8x32xf32>
    %146 = arith.addf %144, %145 : vector<8x32xf32>
    %c0_64 = arith.constant 0 : index
    %c0_65 = arith.constant 0 : index
    %147 = vector.load %arg19[%c0_64, %c0_65] : memref<32x96xf32, #tpu.memory_space<vmem>>, vector<32x96xf32>
    %c0_66 = arith.constant 0 : index
    %c0_67 = arith.constant 0 : index
    %148 = vector.load %arg20[%c0_66, %c0_67] : memref<1x96xf32, #tpu.memory_space<vmem>>, vector<1x96xf32>
    %c0_68 = arith.constant 0 : index
    %c0_69 = arith.constant 0 : index
    %149 = vector.load %arg21[%c0_68, %c0_69] : memref<32x32xf32, #tpu.memory_space<vmem>>, vector<32x32xf32>
    %c0_70 = arith.constant 0 : index
    %c0_71 = arith.constant 0 : index
    %150 = vector.load %arg22[%c0_70, %c0_71] : memref<1x32xf32, #tpu.memory_space<vmem>>, vector<1x32xf32>
    %c0_72 = arith.constant 0 : index
    %c0_73 = arith.constant 0 : index
    %151 = vector.load %arg23[%c0_72, %c0_73] : memref<32x128xf32, #tpu.memory_space<vmem>>, vector<32x128xf32>
    %c0_74 = arith.constant 0 : index
    %c0_75 = arith.constant 0 : index
    %152 = vector.load %arg24[%c0_74, %c0_75] : memref<1x128xf32, #tpu.memory_space<vmem>>, vector<1x128xf32>
    %c0_76 = arith.constant 0 : index
    %c0_77 = arith.constant 0 : index
    %153 = vector.load %arg25[%c0_76, %c0_77] : memref<128x32xf32, #tpu.memory_space<vmem>>, vector<128x32xf32>
    %c0_78 = arith.constant 0 : index
    %c0_79 = arith.constant 0 : index
    %154 = vector.load %arg26[%c0_78, %c0_79] : memref<1x32xf32, #tpu.memory_space<vmem>>, vector<1x32xf32>
    %c0_80 = arith.constant 0 : index
    %c0_81 = arith.constant 0 : index
    %155 = vector.load %arg27[%c0_80, %c0_81] : memref<1x32xf32, #tpu.memory_space<vmem>>, vector<1x32xf32>
    %c0_82 = arith.constant 0 : index
    %c0_83 = arith.constant 0 : index
    %156 = vector.load %arg28[%c0_82, %c0_83] : memref<1x32xf32, #tpu.memory_space<vmem>>, vector<1x32xf32>
    %c0_84 = arith.constant 0 : index
    %c0_85 = arith.constant 0 : index
    %157 = vector.load %arg29[%c0_84, %c0_85] : memref<1x32xf32, #tpu.memory_space<vmem>>, vector<1x32xf32>
    %c0_86 = arith.constant 0 : index
    %c0_87 = arith.constant 0 : index
    %158 = vector.load %arg30[%c0_86, %c0_87] : memref<1x32xf32, #tpu.memory_space<vmem>>, vector<1x32xf32>
    %cst_88 = arith.constant dense<0.000000e+00> : vector<8x96xf32>
    %159 = tpu.matmul %146, %147, %cst_88 {dimension_numbers = #tpu.dot_dimension_numbers<[1], [0], [0], [1], [0, 0, 1, 1], [], []>} : vector<8x32xf32>, vector<32x96xf32>, vector<8x96xf32> -> vector<8x96xf32>
    %160 = vector.broadcast %148 : vector<1x96xf32> to vector<8x96xf32>
    %161 = arith.addf %159, %160 : vector<8x96xf32>
    %162 = vector.extract_strided_slice %161 {offsets = [0, 0], sizes = [8, 32], strides = [1, 1]} : vector<8x96xf32> to vector<8x32xf32>
    %cst_89 = arith.constant 0.353553385 : f32
    %163 = vector.broadcast %cst_89 : f32 to vector<8x32xf32>
    %164 = arith.mulf %162, %163 : vector<8x32xf32>
    %165 = vector.extract_strided_slice %161 {offsets = [0, 32], sizes = [8, 32], strides = [1, 1]} : vector<8x96xf32> to vector<8x32xf32>
    %166 = vector.extract_strided_slice %161 {offsets = [0, 64], sizes = [8, 32], strides = [1, 1]} : vector<8x96xf32> to vector<8x32xf32>
    %167 = vector.extract_strided_slice %164 {offsets = [0, 0], sizes = [8, 8], strides = [1, 1]} : vector<8x32xf32> to vector<8x8xf32>
    %168 = vector.extract_strided_slice %165 {offsets = [0, 0], sizes = [8, 8], strides = [1, 1]} : vector<8x32xf32> to vector<8x8xf32>
    %169 = vector.extract_strided_slice %166 {offsets = [0, 0], sizes = [8, 8], strides = [1, 1]} : vector<8x32xf32> to vector<8x8xf32>
    %cst_90 = arith.constant dense<0.000000e+00> : vector<8x8xf32>
    %170 = tpu.matmul %167, %168, %cst_90 {dimension_numbers = #tpu.dot_dimension_numbers<[1], [1], [0], [0], [0, 0, 1, 0], [], []>} : vector<8x8xf32>, vector<8x8xf32>, vector<8x8xf32> -> vector<8x8xf32>
    %cst_91 = arith.constant dense<0xFF800000> : vector<8xf32>
    %171 = vector.multi_reduction <maximumf>, %170, %cst_91 [1] : vector<8x8xf32> to vector<8xf32>
    %172 = vector.shape_cast %171 : vector<8xf32> to vector<8x1xf32>
    %173 = vector.broadcast %172 : vector<8x1xf32> to vector<8x8xf32>
    %174 = arith.subf %170, %173 : vector<8x8xf32>
    %175 = math.exp %174 : vector<8x8xf32>
    %cst_92 = arith.constant dense<0.000000e+00> : vector<8xf32>
    %176 = vector.multi_reduction <add>, %175, %cst_92 [1] : vector<8x8xf32> to vector<8xf32>
    %177 = vector.shape_cast %176 : vector<8xf32> to vector<8x1xf32>
    %178 = tpu.reciprocal %177 {approx = true} : vector<8x1xf32> -> vector<8x1xf32>
    %179 = vector.broadcast %178 : vector<8x1xf32> to vector<8x8xf32>
    %180 = arith.mulf %175, %179 : vector<8x8xf32>
    %cst_93 = arith.constant dense<0.000000e+00> : vector<8x8xf32>
    %181 = tpu.matmul %180, %169, %cst_93 {dimension_numbers = #tpu.dot_dimension_numbers<[1], [0], [0], [1], [0, 0, 1, 1], [], []>} : vector<8x8xf32>, vector<8x8xf32>, vector<8x8xf32> -> vector<8x8xf32>
    %182 = vector.extract_strided_slice %164 {offsets = [0, 8], sizes = [8, 8], strides = [1, 1]} : vector<8x32xf32> to vector<8x8xf32>
    %183 = vector.extract_strided_slice %165 {offsets = [0, 8], sizes = [8, 8], strides = [1, 1]} : vector<8x32xf32> to vector<8x8xf32>
    %184 = vector.extract_strided_slice %166 {offsets = [0, 8], sizes = [8, 8], strides = [1, 1]} : vector<8x32xf32> to vector<8x8xf32>
    %cst_94 = arith.constant dense<0.000000e+00> : vector<8x8xf32>
    %185 = tpu.matmul %182, %183, %cst_94 {dimension_numbers = #tpu.dot_dimension_numbers<[1], [1], [0], [0], [0, 0, 1, 0], [], []>} : vector<8x8xf32>, vector<8x8xf32>, vector<8x8xf32> -> vector<8x8xf32>
    %cst_95 = arith.constant dense<0xFF800000> : vector<8xf32>
    %186 = vector.multi_reduction <maximumf>, %185, %cst_95 [1] : vector<8x8xf32> to vector<8xf32>
    %187 = vector.shape_cast %186 : vector<8xf32> to vector<8x1xf32>
    %188 = vector.broadcast %187 : vector<8x1xf32> to vector<8x8xf32>
    %189 = arith.subf %185, %188 : vector<8x8xf32>
    %190 = math.exp %189 : vector<8x8xf32>
    %cst_96 = arith.constant dense<0.000000e+00> : vector<8xf32>
    %191 = vector.multi_reduction <add>, %190, %cst_96 [1] : vector<8x8xf32> to vector<8xf32>
    %192 = vector.shape_cast %191 : vector<8xf32> to vector<8x1xf32>
    %193 = tpu.reciprocal %192 {approx = true} : vector<8x1xf32> -> vector<8x1xf32>
    %194 = vector.broadcast %193 : vector<8x1xf32> to vector<8x8xf32>
    %195 = arith.mulf %190, %194 : vector<8x8xf32>
    %cst_97 = arith.constant dense<0.000000e+00> : vector<8x8xf32>
    %196 = tpu.matmul %195, %184, %cst_97 {dimension_numbers = #tpu.dot_dimension_numbers<[1], [0], [0], [1], [0, 0, 1, 1], [], []>} : vector<8x8xf32>, vector<8x8xf32>, vector<8x8xf32> -> vector<8x8xf32>
    %197 = vector.extract_strided_slice %164 {offsets = [0, 16], sizes = [8, 8], strides = [1, 1]} : vector<8x32xf32> to vector<8x8xf32>
    %198 = vector.extract_strided_slice %165 {offsets = [0, 16], sizes = [8, 8], strides = [1, 1]} : vector<8x32xf32> to vector<8x8xf32>
    %199 = vector.extract_strided_slice %166 {offsets = [0, 16], sizes = [8, 8], strides = [1, 1]} : vector<8x32xf32> to vector<8x8xf32>
    %cst_98 = arith.constant dense<0.000000e+00> : vector<8x8xf32>
    %200 = tpu.matmul %197, %198, %cst_98 {dimension_numbers = #tpu.dot_dimension_numbers<[1], [1], [0], [0], [0, 0, 1, 0], [], []>} : vector<8x8xf32>, vector<8x8xf32>, vector<8x8xf32> -> vector<8x8xf32>
    %cst_99 = arith.constant dense<0xFF800000> : vector<8xf32>
    %201 = vector.multi_reduction <maximumf>, %200, %cst_99 [1] : vector<8x8xf32> to vector<8xf32>
    %202 = vector.shape_cast %201 : vector<8xf32> to vector<8x1xf32>
    %203 = vector.broadcast %202 : vector<8x1xf32> to vector<8x8xf32>
    %204 = arith.subf %200, %203 : vector<8x8xf32>
    %205 = math.exp %204 : vector<8x8xf32>
    %cst_100 = arith.constant dense<0.000000e+00> : vector<8xf32>
    %206 = vector.multi_reduction <add>, %205, %cst_100 [1] : vector<8x8xf32> to vector<8xf32>
    %207 = vector.shape_cast %206 : vector<8xf32> to vector<8x1xf32>
    %208 = tpu.reciprocal %207 {approx = true} : vector<8x1xf32> -> vector<8x1xf32>
    %209 = vector.broadcast %208 : vector<8x1xf32> to vector<8x8xf32>
    %210 = arith.mulf %205, %209 : vector<8x8xf32>
    %cst_101 = arith.constant dense<0.000000e+00> : vector<8x8xf32>
    %211 = tpu.matmul %210, %199, %cst_101 {dimension_numbers = #tpu.dot_dimension_numbers<[1], [0], [0], [1], [0, 0, 1, 1], [], []>} : vector<8x8xf32>, vector<8x8xf32>, vector<8x8xf32> -> vector<8x8xf32>
    %212 = vector.extract_strided_slice %164 {offsets = [0, 24], sizes = [8, 8], strides = [1, 1]} : vector<8x32xf32> to vector<8x8xf32>
    %213 = vector.extract_strided_slice %165 {offsets = [0, 24], sizes = [8, 8], strides = [1, 1]} : vector<8x32xf32> to vector<8x8xf32>
    %214 = vector.extract_strided_slice %166 {offsets = [0, 24], sizes = [8, 8], strides = [1, 1]} : vector<8x32xf32> to vector<8x8xf32>
    %cst_102 = arith.constant dense<0.000000e+00> : vector<8x8xf32>
    %215 = tpu.matmul %212, %213, %cst_102 {dimension_numbers = #tpu.dot_dimension_numbers<[1], [1], [0], [0], [0, 0, 1, 0], [], []>} : vector<8x8xf32>, vector<8x8xf32>, vector<8x8xf32> -> vector<8x8xf32>
    %cst_103 = arith.constant dense<0xFF800000> : vector<8xf32>
    %216 = vector.multi_reduction <maximumf>, %215, %cst_103 [1] : vector<8x8xf32> to vector<8xf32>
    %217 = vector.shape_cast %216 : vector<8xf32> to vector<8x1xf32>
    %218 = vector.broadcast %217 : vector<8x1xf32> to vector<8x8xf32>
    %219 = arith.subf %215, %218 : vector<8x8xf32>
    %220 = math.exp %219 : vector<8x8xf32>
    %cst_104 = arith.constant dense<0.000000e+00> : vector<8xf32>
    %221 = vector.multi_reduction <add>, %220, %cst_104 [1] : vector<8x8xf32> to vector<8xf32>
    %222 = vector.shape_cast %221 : vector<8xf32> to vector<8x1xf32>
    %223 = tpu.reciprocal %222 {approx = true} : vector<8x1xf32> -> vector<8x1xf32>
    %224 = vector.broadcast %223 : vector<8x1xf32> to vector<8x8xf32>
    %225 = arith.mulf %220, %224 : vector<8x8xf32>
    %cst_105 = arith.constant dense<0.000000e+00> : vector<8x8xf32>
    %226 = tpu.matmul %225, %214, %cst_105 {dimension_numbers = #tpu.dot_dimension_numbers<[1], [0], [0], [1], [0, 0, 1, 1], [], []>} : vector<8x8xf32>, vector<8x8xf32>, vector<8x8xf32> -> vector<8x8xf32>
    %227 = tpu.concatenate %181, %196, %211, %226 in 1 : vector<8x8xf32>, vector<8x8xf32>, vector<8x8xf32>, vector<8x8xf32> -> vector<8x32xf32>
    %cst_106 = arith.constant dense<0.000000e+00> : vector<8x32xf32>
    %228 = tpu.matmul %227, %149, %cst_106 {dimension_numbers = #tpu.dot_dimension_numbers<[1], [0], [0], [1], [0, 0, 1, 1], [], []>} : vector<8x32xf32>, vector<32x32xf32>, vector<8x32xf32> -> vector<8x32xf32>
    %229 = vector.broadcast %150 : vector<1x32xf32> to vector<8x32xf32>
    %230 = arith.addf %228, %229 : vector<8x32xf32>
    %231 = arith.addf %146, %230 : vector<8x32xf32>
    %cst_107 = arith.constant dense<0.000000e+00> : vector<8xf32>
    %232 = vector.multi_reduction <add>, %231, %cst_107 [1] : vector<8x32xf32> to vector<8xf32>
    %233 = vector.shape_cast %232 : vector<8xf32> to vector<8x1xf32>
    %cst_108 = arith.constant 3.200000e+01 : f32
    %234 = vector.broadcast %cst_108 : f32 to vector<8x1xf32>
    %235 = arith.divf %233, %234 : vector<8x1xf32>
    %236 = vector.broadcast %235 : vector<8x1xf32> to vector<8x32xf32>
    %237 = arith.subf %231, %236 : vector<8x32xf32>
    %238 = arith.mulf %237, %237 : vector<8x32xf32>
    %cst_109 = arith.constant dense<0.000000e+00> : vector<8xf32>
    %239 = vector.multi_reduction <add>, %238, %cst_109 [1] : vector<8x32xf32> to vector<8xf32>
    %240 = vector.shape_cast %239 : vector<8xf32> to vector<8x1xf32>
    %cst_110 = arith.constant 3.200000e+01 : f32
    %241 = vector.broadcast %cst_110 : f32 to vector<8x1xf32>
    %242 = arith.divf %240, %241 : vector<8x1xf32>
    %243 = vector.broadcast %235 : vector<8x1xf32> to vector<8x32xf32>
    %244 = arith.subf %231, %243 : vector<8x32xf32>
    %cst_111 = arith.constant 9.99999974E-6 : f32
    %245 = vector.broadcast %cst_111 : f32 to vector<8x1xf32>
    %246 = arith.addf %242, %245 : vector<8x1xf32>
    %247 = math.rsqrt %246 : vector<8x1xf32>
    %248 = vector.broadcast %247 : vector<8x1xf32> to vector<8x32xf32>
    %249 = arith.mulf %244, %248 : vector<8x32xf32>
    %250 = vector.broadcast %155 : vector<1x32xf32> to vector<8x32xf32>
    %251 = arith.mulf %249, %250 : vector<8x32xf32>
    %252 = vector.broadcast %156 : vector<1x32xf32> to vector<8x32xf32>
    %253 = arith.addf %251, %252 : vector<8x32xf32>
    %cst_112 = arith.constant dense<0.000000e+00> : vector<8x128xf32>
    %254 = tpu.matmul %253, %151, %cst_112 {dimension_numbers = #tpu.dot_dimension_numbers<[1], [0], [0], [1], [0, 0, 1, 1], [], []>} : vector<8x32xf32>, vector<32x128xf32>, vector<8x128xf32> -> vector<8x128xf32>
    %255 = vector.broadcast %152 : vector<1x128xf32> to vector<8x128xf32>
    %256 = arith.addf %254, %255 : vector<8x128xf32>
    %cst_113 = arith.constant 0.000000e+00 : f32
    %257 = vector.broadcast %cst_113 : f32 to vector<8x128xf32>
    %258 = arith.maximumf %256, %257 : vector<8x128xf32>
    %cst_114 = arith.constant dense<0.000000e+00> : vector<8x32xf32>
    %259 = tpu.matmul %258, %153, %cst_114 {dimension_numbers = #tpu.dot_dimension_numbers<[1], [0], [0], [1], [0, 0, 1, 1], [], []>} : vector<8x128xf32>, vector<128x32xf32>, vector<8x32xf32> -> vector<8x32xf32>
    %260 = vector.broadcast %154 : vector<1x32xf32> to vector<8x32xf32>
    %261 = arith.addf %259, %260 : vector<8x32xf32>
    %262 = arith.addf %253, %261 : vector<8x32xf32>
    %cst_115 = arith.constant dense<0.000000e+00> : vector<8xf32>
    %263 = vector.multi_reduction <add>, %262, %cst_115 [1] : vector<8x32xf32> to vector<8xf32>
    %264 = vector.shape_cast %263 : vector<8xf32> to vector<8x1xf32>
    %cst_116 = arith.constant 3.200000e+01 : f32
    %265 = vector.broadcast %cst_116 : f32 to vector<8x1xf32>
    %266 = arith.divf %264, %265 : vector<8x1xf32>
    %267 = vector.broadcast %266 : vector<8x1xf32> to vector<8x32xf32>
    %268 = arith.subf %262, %267 : vector<8x32xf32>
    %269 = arith.mulf %268, %268 : vector<8x32xf32>
    %cst_117 = arith.constant dense<0.000000e+00> : vector<8xf32>
    %270 = vector.multi_reduction <add>, %269, %cst_117 [1] : vector<8x32xf32> to vector<8xf32>
    %271 = vector.shape_cast %270 : vector<8xf32> to vector<8x1xf32>
    %cst_118 = arith.constant 3.200000e+01 : f32
    %272 = vector.broadcast %cst_118 : f32 to vector<8x1xf32>
    %273 = arith.divf %271, %272 : vector<8x1xf32>
    %274 = vector.broadcast %266 : vector<8x1xf32> to vector<8x32xf32>
    %275 = arith.subf %262, %274 : vector<8x32xf32>
    %cst_119 = arith.constant 9.99999974E-6 : f32
    %276 = vector.broadcast %cst_119 : f32 to vector<8x1xf32>
    %277 = arith.addf %273, %276 : vector<8x1xf32>
    %278 = math.rsqrt %277 : vector<8x1xf32>
    %279 = vector.broadcast %278 : vector<8x1xf32> to vector<8x32xf32>
    %280 = arith.mulf %275, %279 : vector<8x32xf32>
    %281 = vector.broadcast %157 : vector<1x32xf32> to vector<8x32xf32>
    %282 = arith.mulf %280, %281 : vector<8x32xf32>
    %283 = vector.broadcast %158 : vector<1x32xf32> to vector<8x32xf32>
    %284 = arith.addf %282, %283 : vector<8x32xf32>
    %285 = vector.extract_strided_slice %284 {offsets = [7, 0], sizes = [1, 32], strides = [1, 1]} : vector<8x32xf32> to vector<1x32xf32>
    %c0_120 = arith.constant 0 : index
    %c0_121 = arith.constant 0 : index
    %286 = vector.load %arg5[%c0_120, %c0_121] : memref<32x128xf32, #tpu.memory_space<vmem>>, vector<32x128xf32>
    %cst_122 = arith.constant dense<0.000000e+00> : vector<1x128xf32>
    %287 = tpu.matmul %285, %286, %cst_122 {dimension_numbers = #tpu.dot_dimension_numbers<[1], [0], [0], [1], [0, 0, 1, 1], [], []>} : vector<1x32xf32>, vector<32x128xf32>, vector<1x128xf32> -> vector<1x128xf32>
    %c0_123 = arith.constant 0 : index
    %c0_124 = arith.constant 0 : index
    %288 = vector.load %arg6[%c0_123, %c0_124] : memref<1x128xf32, #tpu.memory_space<vmem>>, vector<1x128xf32>
    %289 = arith.addf %287, %288 : vector<1x128xf32>
    %c0_125 = arith.constant 0 : index
    %c0_126 = arith.constant 0 : index
    %c0_127 = arith.constant 0 : index
    %290 = vector.load %arg31[%c0_125, %c0_126, %c0_127] : memref<1x1x128xf32, #tpu.memory_space<vmem>>, vector<1x1x128xf32>
    %291 = vector.shape_cast %290 : vector<1x1x128xf32> to vector<1x128xf32>
    %292 = vector.shape_cast %289 : vector<1x128xf32> to vector<1x1x128xf32>
    tpu.vector_store %arg31[%c0_125, %c0_126, %c0_127], %292 {strides = array<i32>} : memref<1x1x128xf32, #tpu.memory_space<vmem>>, vector<1x1x128xf32>,
    return
  }
  func.func @transform_0(%arg0: i32) -> (i32, i32, i32) {
    %c0_i32 = arith.constant 0 : i32
    %c0_i32_0 = arith.constant 0 : i32
    %c0_i32_1 = arith.constant 0 : i32
    return %arg0, %c0_i32, %c0_i32_0 : i32, i32, i32
  }
  func.func @transform_1(%arg0: i32) -> (i32, i32) {
    %c0_i32 = arith.constant 0 : i32
    %c0_i32_0 = arith.constant 0 : i32
    %c0_i32_1 = arith.constant 0 : i32
    return %c0_i32, %c0_i32_0 : i32, i32
  }
  func.func @transform_2(%arg0: i32) -> (i32, i32) {
    %c0_i32 = arith.constant 0 : i32
    %c0_i32_0 = arith.constant 0 : i32
    %c0_i32_1 = arith.constant 0 : i32
    return %c0_i32, %c0_i32_0 : i32, i32
  }
  func.func @transform_3(%arg0: i32) -> (i32, i32) {
    %c0_i32 = arith.constant 0 : i32
    %c0_i32_0 = arith.constant 0 : i32
    %c0_i32_1 = arith.constant 0 : i32
    return %c0_i32, %c0_i32_0 : i32, i32
  }
  func.func @transform_4(%arg0: i32) -> (i32, i32) {
    %c0_i32 = arith.constant 0 : i32
    %c0_i32_0 = arith.constant 0 : i32
    %c0_i32_1 = arith.constant 0 : i32
    return %c0_i32, %c0_i32_0 : i32, i32
  }
  func.func @transform_5(%arg0: i32) -> (i32, i32) {
    %c0_i32 = arith.constant 0 : i32
    %c0_i32_0 = arith.constant 0 : i32
    %c0_i32_1 = arith.constant 0 : i32
    return %c0_i32, %c0_i32_0 : i32, i32
  }
  func.func @transform_6(%arg0: i32) -> (i32, i32) {
    %c0_i32 = arith.constant 0 : i32
    %c0_i32_0 = arith.constant 0 : i32
    %c0_i32_1 = arith.constant 0 : i32
    return %c0_i32, %c0_i32_0 : i32, i32
  }
  func.func @transform_7(%arg0: i32) -> (i32, i32) {
    %c0_i32 = arith.constant 0 : i32
    %c0_i32_0 = arith.constant 0 : i32
    %c0_i32_1 = arith.constant 0 : i32
    return %c0_i32, %c0_i32_0 : i32, i32
  }
  func.func @transform_8(%arg0: i32) -> (i32, i32) {
    %c0_i32 = arith.constant 0 : i32
    %c0_i32_0 = arith.constant 0 : i32
    %c0_i32_1 = arith.constant 0 : i32
    return %c0_i32, %c0_i32_0 : i32, i32
  }
  func.func @transform_9(%arg0: i32) -> (i32, i32) {
    %c0_i32 = arith.constant 0 : i32
    %c0_i32_0 = arith.constant 0 : i32
    %c0_i32_1 = arith.constant 0 : i32
    return %c0_i32, %c0_i32_0 : i32, i32
  }
  func.func @transform_10(%arg0: i32) -> (i32, i32) {
    %c0_i32 = arith.constant 0 : i32
    %c0_i32_0 = arith.constant 0 : i32
    %c0_i32_1 = arith.constant 0 : i32
    return %c0_i32, %c0_i32_0 : i32, i32
  }
  func.func @transform_11(%arg0: i32) -> (i32, i32) {
    %c0_i32 = arith.constant 0 : i32
    %c0_i32_0 = arith.constant 0 : i32
    %c0_i32_1 = arith.constant 0 : i32
    return %c0_i32, %c0_i32_0 : i32, i32
  }
  func.func @transform_12(%arg0: i32) -> (i32, i32) {
    %c0_i32 = arith.constant 0 : i32
    %c0_i32_0 = arith.constant 0 : i32
    %c0_i32_1 = arith.constant 0 : i32
    return %c0_i32, %c0_i32_0 : i32, i32
  }
  func.func @transform_13(%arg0: i32) -> (i32, i32) {
    %c0_i32 = arith.constant 0 : i32
    %c0_i32_0 = arith.constant 0 : i32
    %c0_i32_1 = arith.constant 0 : i32
    return %c0_i32, %c0_i32_0 : i32, i32
  }
  func.func @transform_14(%arg0: i32) -> (i32, i32) {
    %c0_i32 = arith.constant 0 : i32
    %c0_i32_0 = arith.constant 0 : i32
    %c0_i32_1 = arith.constant 0 : i32
    return %c0_i32, %c0_i32_0 : i32, i32
  }
  func.func @transform_15(%arg0: i32) -> (i32, i32) {
    %c0_i32 = arith.constant 0 : i32
    %c0_i32_0 = arith.constant 0 : i32
    %c0_i32_1 = arith.constant 0 : i32
    return %c0_i32, %c0_i32_0 : i32, i32
  }
  func.func @transform_16(%arg0: i32) -> (i32, i32) {
    %c0_i32 = arith.constant 0 : i32
    %c0_i32_0 = arith.constant 0 : i32
    %c0_i32_1 = arith.constant 0 : i32
    return %c0_i32, %c0_i32_0 : i32, i32
  }
  func.func @transform_17(%arg0: i32) -> (i32, i32) {
    %c0_i32 = arith.constant 0 : i32
    %c0_i32_0 = arith.constant 0 : i32
    %c0_i32_1 = arith.constant 0 : i32
    return %c0_i32, %c0_i32_0 : i32, i32
  }
  func.func @transform_18(%arg0: i32) -> (i32, i32) {
    %c0_i32 = arith.constant 0 : i32
    %c0_i32_0 = arith.constant 0 : i32
    %c0_i32_1 = arith.constant 0 : i32
    return %c0_i32, %c0_i32_0 : i32, i32
  }
  func.func @transform_19(%arg0: i32) -> (i32, i32) {
    %c0_i32 = arith.constant 0 : i32
    %c0_i32_0 = arith.constant 0 : i32
    %c0_i32_1 = arith.constant 0 : i32
    return %c0_i32, %c0_i32_0 : i32, i32
  }
  func.func @transform_20(%arg0: i32) -> (i32, i32) {
    %c0_i32 = arith.constant 0 : i32
    %c0_i32_0 = arith.constant 0 : i32
    %c0_i32_1 = arith.constant 0 : i32
    return %c0_i32, %c0_i32_0 : i32, i32
  }
  func.func @transform_21(%arg0: i32) -> (i32, i32) {
    %c0_i32 = arith.constant 0 : i32
    %c0_i32_0 = arith.constant 0 : i32
    %c0_i32_1 = arith.constant 0 : i32
    return %c0_i32, %c0_i32_0 : i32, i32
  }
  func.func @transform_22(%arg0: i32) -> (i32, i32) {
    %c0_i32 = arith.constant 0 : i32
    %c0_i32_0 = arith.constant 0 : i32
    %c0_i32_1 = arith.constant 0 : i32
    return %c0_i32, %c0_i32_0 : i32, i32
  }
  func.func @transform_23(%arg0: i32) -> (i32, i32) {
    %c0_i32 = arith.constant 0 : i32
    %c0_i32_0 = arith.constant 0 : i32
    %c0_i32_1 = arith.constant 0 : i32
    return %c0_i32, %c0_i32_0 : i32, i32
  }
  func.func @transform_24(%arg0: i32) -> (i32, i32) {
    %c0_i32 = arith.constant 0 : i32
    %c0_i32_0 = arith.constant 0 : i32
    %c0_i32_1 = arith.constant 0 : i32
    return %c0_i32, %c0_i32_0 : i32, i32
  }
  func.func @transform_25(%arg0: i32) -> (i32, i32) {
    %c0_i32 = arith.constant 0 : i32
    %c0_i32_0 = arith.constant 0 : i32
    %c0_i32_1 = arith.constant 0 : i32
    return %c0_i32, %c0_i32_0 : i32, i32
  }
  func.func @transform_26(%arg0: i32) -> (i32, i32) {
    %c0_i32 = arith.constant 0 : i32
    %c0_i32_0 = arith.constant 0 : i32
    %c0_i32_1 = arith.constant 0 : i32
    return %c0_i32, %c0_i32_0 : i32, i32
  }
  func.func @transform_27(%arg0: i32) -> (i32, i32) {
    %c0_i32 = arith.constant 0 : i32
    %c0_i32_0 = arith.constant 0 : i32
    %c0_i32_1 = arith.constant 0 : i32
    return %c0_i32, %c0_i32_0 : i32, i32
  }
  func.func @transform_28(%arg0: i32) -> (i32, i32) {
    %c0_i32 = arith.constant 0 : i32
    %c0_i32_0 = arith.constant 0 : i32
    %c0_i32_1 = arith.constant 0 : i32
    return %c0_i32, %c0_i32_0 : i32, i32
  }
  func.func @transform_29(%arg0: i32) -> (i32, i32) {
    %c0_i32 = arith.constant 0 : i32
    %c0_i32_0 = arith.constant 0 : i32
    %c0_i32_1 = arith.constant 0 : i32
    return %c0_i32, %c0_i32_0 : i32, i32
  }
  func.func @transform_30(%arg0: i32) -> (i32, i32, i32) {
    %c0_i32 = arith.constant 0 : i32
    %c0_i32_0 = arith.constant 0 : i32
    %c0_i32_1 = arith.constant 0 : i32
    return %arg0, %c0_i32, %c0_i32_0 : i32, i32, i32
  }
}

</mosaic_0001>

<bundles_post_ra>
// kernel: transformer_forward.1
= control target key start
LH: loop header
LB: loop body
LE: loop exit
PB: predicated region body
PF: predicated region fallthrough
CT: control target
= control target key end

     0   :  { %s3939_s6 = smov 1   ;;  %s3940_s10 = smov 2   ;;  %s4565_s0 = inlined_call_operand.smem [shape: u32[31], index: -1, kind: input, shape index: {}] }
   0x1   :  { %s3994_s5 = sld [smem:[%s4565_s0]]   ;;  %s3941_s14 = smov 3  }
   0x2   :  { %s3999_s9 = sld [smem:[%s4565_s0 + %s3939_s6]]   ;;  %s3942_s18 = smov 4  }
   0x3   :  { %s4004_s13 = sld [smem:[%s4565_s0 + %s3940_s10]]   ;;  %s3943_s22 = smov 5  }
   0x4   :  { %s4009_s17 = sld [smem:[%s4565_s0 + %s3941_s14]]   ;;  %s3944_s26 = smov 6  }
   0x5   :  { %s4014_s21 = sld [smem:[%s4565_s0 + %s3942_s18]]   ;;  %s3945_s30 = smov 7  }
   0x6   :  { %s4019_s25 = sld [smem:[%s4565_s0 + %s3943_s22]]   ;;  %s3946_s4 = smov 8  }
   0x7   :  { %4589 = sst [smem:[#allocation5_spill]] %s3994_s5  ;;  %s3947_s10 = smov 9  }
   0x8   :  { %4590 = sst [smem:[#allocation6_spill]] %s3999_s9  ;;  %s3948_s15 = smov 10  }
   0x9   :  { %s4024_s29 = sld [smem:[%s4565_s0 + %s3944_s26]]   ;;  %s3949_s20 = smov 11  }
   0xa   :  { %s4029_s3 = sld [smem:[%s4565_s0 + %s3945_s30]]   ;;  %s3950_s26 = smov 12  }
   0xb   :  { %4591 = sst [smem:[#allocation7_spill]] %s4014_s21  ;;  %s3951_s1 = smov 13  }
   0xc   :  { %4592 = sst [smem:[#allocation8_spill]] %s4019_s25  ;;  %s3952_s7 = smov 14  }
   0xd   :  { %s4034_s8 = sld [smem:[%s4565_s0 + %s3946_s4]]   ;;  %s3954_s22 = smov 16  }
   0xe   :  { %s4039_s14 = sld [smem:[%s4565_s0 + %s3947_s10]]   ;;  %s3955_s28 = smov 17  }
   0xf   :  { %s4044_s19 = sld [smem:[%s4565_s0 + %s3948_s15]]   ;;  %s3953_s15 = smov 15  }
  0x10   :  { %4593 = sst [smem:[#allocation9_spill]] %s4029_s3 }
  0x11   :  { %s4049_s24 = sld [smem:[%s4565_s0 + %s3949_s20]]  }
  0x12   :  { %s4054_s30 = sld [smem:[%s4565_s0 + %s3950_s26]]  }
  0x13   :  { %4594 = sst [smem:[#allocation10_spill]] %s4034_s8 }
  0x14   :  { %s4059_s6 = sld [smem:[%s4565_s0 + %s3951_s1]]  }
  0x15   :  { %s4064_s12 = sld [smem:[%s4565_s0 + %s3952_s7]]   ;;  %s3956_s7 = smov 18  }
  0x16   :  { %s4069_s20 = sld [smem:[%s4565_s0 + %s3953_s15]]   ;;  %s3957_s15 = smov 19  }
  0x17   :  { %s4074_s27 = sld [smem:[%s4565_s0 + %s3954_s22]]   ;;  %s3958_s22 = smov 20  }
  0x18   :  { %s4079_s4 = sld [smem:[%s4565_s0 + %s3955_s28]]   ;;  %s3959_s28 = smov 21  }
  0x19   :  { %s4084_s25 = sld [smem:[%s4565_s0 + %s3956_s7]]   ;;  %s3960_s7 = smov 22  }
  0x1a   :  { %4595 = sst [smem:[#allocation11_spill]] %s4059_s6 }
  0x1b   :  { %4596 = sst [smem:[#allocation12_spill]] %s4064_s12 }
  0x1c   :  { %s4089_s21 = sld [smem:[%s4565_s0 + %s3957_s15]]   ;;  %s3961_s15 = smov 23  }
  0x1d   :  { %4597 = sst [smem:[#allocation13_spill]] %s4074_s27 }
  0x1e   :  { %4598 = sst [smem:[#allocation14_spill]] %s4079_s4 }
  0x1f   :  { %4599 = sst [smem:[#allocation15_spill]] %s4084_s25 }
  0x20   :  { %s4094_s27 = sld [smem:[%s4565_s0 + %s3958_s22]]   ;;  %s3962_s22 = smov 24  }
  0x21   :  { %s4099_s4 = sld [smem:[%s4565_s0 + %s3959_s28]]   ;;  %s3963_s28 = smov 25  }
  0x22   :  { %4600 = sst [smem:[#allocation16_spill]] %s4089_s21 }
  0x23   :  { %s4104_s25 = sld [smem:[%s4565_s0 + %s3960_s7]]   ;;  %s3964_s7 = smov 26  }
  0x24   :  { %s4109_s21 = sld [smem:[%s4565_s0 + %s3961_s15]]   ;;  %s3965_s15 = smov 27  }
  0x26   :  { %4601 = sst [smem:[#allocation17_spill]] %s4094_s27 }
  0x27   :  { %4602 = sst [smem:[#allocation18_spill]] %s4099_s4 }
  0x28   :  { %s4114_s27 = sld [smem:[%s4565_s0 + %s3962_s22]]   ;;  %s3966_s22 = smov 28  }
  0x29   :  { %4603 = sst [smem:[#allocation19_spill]] %s4104_s25 }
  0x2a   :  { %4604 = sst [smem:[#allocation20_spill]] %s4109_s21 }
  0x2b   :  { %s4119_s4 = sld [smem:[%s4565_s0 + %s3963_s28]]   ;;  %s3967_s28 = smov 29  }
  0x2c   :  { %s4124_s25 = sld [smem:[%s4565_s0 + %s3964_s7]]   ;;  %s3968_s7 = smov 30  }
  0x2d   :  { %s4129_s21 = sld [smem:[%s4565_s0 + %s3965_s15]]  }
  0x2e   :  { %4605 = sst [smem:[#allocation21_spill]] %s4114_s27 }
  0x2f   :  { %s4134_s27 = sld [smem:[%s4565_s0 + %s3966_s22]]  }
  0x31   :  { %4606 = sst [smem:[#allocation22_spill]] %s4119_s4 }
  0x32   :  { %4607 = sst [smem:[#allocation23_spill]] %s4124_s25 }
  0x33   :  { %s4139_s4 = sld [smem:[%s4565_s0 + %s3967_s28]]  }
  0x34   :  { %s4144_s25 = sld [smem:[%s4565_s0 + %s3968_s7]]  }
  0x39   :  { %4608 = sst [smem:[#allocation24_spill]] %s4139_s4 }
  0x3a   :  { %66 = vsyncpa [#allocation3], 0 }
  0x3b   :  { %68 = vsyncpa [#allocation3 + $0x1], 0  ;;  %s4146_s15 = smov 0   ;;  %s4148_s16 = smov 0  }
  0x3c   :  { %s4150_s18 = smov 0   ;;  %s4152_s22 = smov 0  }
  0x3d LB: > { %s4609_s8 = sld [smem:[#allocation10_spill]]  ;;  %s4167_s0 = sadd.s32 4294967295, %s3937_s22   ;;  %s3925_s15 = sphi %s4146_s15, %s4644_s15   ;;  %s3937_s22 = sphi %s4152_s22, %s4647_s22   ;;  %s3933_s18 = sphi %s4150_s18, %s4646_s18   ;;  %s3929_s16 = sphi %s4148_s16, %s4645_s16  }
  0x3e   : > { %s3357_s23 = sadd.s32 4294967294, %s3937_s22   ;;  %s4171_s26 = sadd.s32 1, %s3937_s22  }
  0x3f   : > { %s716_s28 = sadd.s32 1, %s3933_s18  ;;  %s713_s1 = ssub.s32 %s3937_s22, %s4171_s26 }
  0x40   : > { %p726_p0 = scmp.ne.s32.totalorder %s3933_s18, %s3929_s16  ;;  %p714_p1 = scmp.eq.s32.totalorder %s713_s1, 0 }
  0x41   : > { %p727_p2 = scmp.eq.s32.totalorder %s4167_s0, 1  ;;  %p732_p3 = scmp.ne.s32.totalorder %s3929_s16, %s3925_s15 }
  0x42   : > { %p733_p4 = scmp.eq.s32.totalorder %s3357_s23, 1  ;;  %p3360_p7 = scmp.ge.s32.totalorder %s3937_s22, 1 }
  0x43   : > { %s4182_s2 = scalar_select %p714_p1, %s3933_s18, %s716_s28  }
  0x44   : > { %p4184_p5 = por %p727_p2, %p726_p0  ;;  %p4188_p6 = por %p733_p4, %p732_p3 }
  0x45   : > { %p845_p8 = scmp.lt.s32.totalorder %s3937_s22, 3 }
  0x47   : > { %p846_p9 = pnand %p3360_p7, %p845_p8 }
  0x48   : > { %s4612_s5 = sld [smem:[#allocation5_spill]] (!%p846_p9)  ;;  %p921_p10 = scmp.lt.s32.totalorder (!%p846_p9), %s4167_s0, 1 }
  0x49   : > { %849 = sbr.rel (%p846_p9) target bundleno = 6237 (0x185d), region = 140  ;;  %s4613_s9 = sld [smem:[#allocation6_spill]] (!%p846_p9) }
  0x4a   : > { %s4614_s3 = sld [smem:[#allocation9_spill]] (!%p846_p9)  ;;  %s4571_s1 = smov (!%p846_p9), 96  }
  0x4b   : > { %s4615_s12 = sld [smem:[#allocation12_spill]] (!%p846_p9) }
  0x4c   : > { %s4616_s6 = sld [smem:[#allocation11_spill]] (!%p846_p9) }
  0x4d   : > { %s4642_s4 = sld [smem:[#allocation24_spill]] (!%p846_p9) }
  0x4e   : > { %v927_v0 = vld [vmem:[%s4004_s13 + $0x8] sm:$0xff]  ;;  %v3969_v1 = vmov 0.0   ;;  %v926_v2 = vld [vmem:[%s4004_s13] sm:$0xff]  ;;  %vm3970_vm0 = vmmov 0   ;;  %s922_s11 = scalar_select %p921_p10, %s4167_s0, 1  ;;  %vm935_vm1 = vcmask 130048  }
  0x4f   : > { %3518 = vmatprep.subr.mxu0 %v3969_v1  ;;  %3522 = vmatprep.mubr.msk.f32.mxu0 %vm3970_vm0, %v3969_v1  ;;  %v1014_v3 = vld [vmem:[%s4024_s29 + $0x18] sm:$0xff]  ;;  %v1013_v5 = vld [vmem:[%s4024_s29 + $0x10] sm:$0xff]  ;;  %v1012_v6 = vld [vmem:[%s4024_s29 + $0x8] sm:$0xff]  ;;  %vm1053_vm2 = vcmask 261120   ;;  %vm1131_vm3 = vcmask 64512   ;;  %vm1803_vm4 = vcmask 195584  }
  0x50   : > { %3519 = vmatpush3.msra.mxu0 %v927_v0  ;;  %3546 = vmatprep.subr.mxu1 %v3969_v1  ;;  %s3361_s23 = sshll.u32 %s922_s11, 3  ;;  %v1011_v7 = vld [vmem:[%s4024_s29] sm:$0xff]  ;;  %s4583_s11 = smov 120  }
  0x51   : > { %3520 = vmatprep.subr.mxu0 %v3969_v1  ;;  %3548 = vmatprep.mubr.msk.f32.mxu1 %vm3970_vm0, %v3969_v1  ;;  %s924_s28 = scalar_lea.vmem %s4612_s5, %s3361_s23  ;;  %v3362_v8 = vld [vmem:[%s4009_s17] ss:$0 sm:$0xff]  ;;  %s3973_s23 = smov 88  }
  0x52   : > { %3521 = vmatpush3.msra.mxu0 %v926_v2  ;;  %v925_v4 = vld [vmem:[%s924_s28] sm:$0xff]  ;;  %s4573_s28 = smov 80   ;;  %s4574_s5 = smov 72  }
  0x53   : > { %3525 = vmatprep.subr.mxu0 %v3969_v1  ;;  %3523 = vmatmul.mubr.msk.f32.vlgmr.msra.gmra.mxu0 %vm935_vm1, %v925_v4  ;;  %v1009_v10 = vld [vmem:[%s4613_s9] sm:$0xff] }
  0x54   : > { %3526 = vmatpush3.msra.mxu0 %v1014_v3  ;;  %3533 = vmatprep.mubr.msk.f32.mxu0 %vm3970_vm0, %v3969_v1  ;;  %v3364_v14 = vld [vmem:[%s4614_s3] ss:$0 sm:$0xff]  ;;  %s4575_s3 = smov 112  }
  0x55   : > { %3527 = vmatprep.subr.mxu0 %v3969_v1 }
  0x56   : > { %3528 = vmatpush3.msra.mxu0 %v1013_v5 }
  0x57   : > { %3529 = vmatprep.subr.mxu0 %v3969_v1 }
  0x58   : > { %3530 = vmatpush3.msra.mxu0 %v1012_v6 }
  0x59   : > { %3531 = vmatprep.subr.mxu0 %v3969_v1 }
  0x5a   : > { %3532 = vmatpush3.msra.mxu0 %v1011_v7 }
  0x5b   : > { %3536 = vmatprep.subr.mxu0 %v3969_v1 }
 0x113   : > { %v1005_v9 = vpop.f32.mrf.mxu0 }
 0x114   : > { %v1006_v11 = vadd.f32 %v3362_v8, %v1005_v9 }
 0x115   : > { %v3524_v12 = vpop.f32.mrf.mxu0 }
 0x116   : > { %v4220_v13 = vadd.f32 %v1009_v10, %v1006_v11  ;;  %v1019_v11 = vld [vmem:[%s4609_s8 + $0x18] sm:$0xff] }
 0x118   : > { %3534 = vmatmul.mubr.msk.f32.vlgmr.msra.gmra.mxu0 %vm1053_vm2, %v4220_v13 }
 0x119   : > { %3538 = vmatprep.mubr.msk.f32.mxu0 %vm3970_vm0, %v3969_v1 }
 0x1d8   : > { %v1123_v15 = vpop.f32.mrf.mxu0 }
 0x1d9   : > { %v4227_v16 = vadd.f32 %v3364_v14, %v1123_v15 }
 0x1da   : > { %v3535_v17 = vpop.f32.mrf.mxu0 }
 0x1db   : > { %1129 = vrot.lane.b32.xlu0 %v4227_v16, %s4571_s1  ;;  %v1127_v18 = vmul.f32 0.35355338, %v4227_v16  ;;  %s4572_s1 = smov 104   ;;  %v1018_v17 = vld [vmem:[%s4609_s8 + $0x10] sm:$0xff] }
 0x1dd   : > { %1294 = vrot.lane.b32.xlu1 %v1127_v18, %s4583_s11  ;;  %s4621_s11 = smov 96  }
 0x1df   : > { %1296 = vrot.lane.b32.xlu0 %v4227_v16, %s3973_s23 }
 0x1e1   : > { %1461 = vrot.lane.b32.xlu1 %v4227_v16, %s4573_s28  ;;  %s4582_s28 = smov 64  }
 0x1e3   : > { %1459 = vrot.lane.b32.xlu0 %v1127_v18, %s4575_s3  ;;  %s4577_s3 = smov 40  }
 0x1e5   : > { %1626 = vrot.lane.b32.xlu1 %v4227_v16, %s4574_s5  ;;  %s4576_s5 = smov 48  }
 0x1e7   : > { %1624 = vrot.lane.b32.xlu0 %v1127_v18, %s4572_s1  ;;  %s4581_s1 = smov 56  }
 0x24d   : > { %v1130_v19 = vpop.permute.xlu0 %1129 }
 0x24e   : > { %3537 = vmatpush3.xpose.msk.msra.mxu0 %vm1131_vm3, %v1130_v19  ;;  %v1016_v19 = vld [vmem:[%s4609_s8] sm:$0xff] }
 0x24f   : > { %v1295_v20 = vpop.permute.xlu1 %1294  ;;  %3541 = vmatprep.subr.mxu0 %v3969_v1 }
 0x251   : > { %v1297_v21 = vpop.permute.xlu0 %1296  ;;  %3539 = vmatmul.mubr.msk.f32.vlgmr.msra.gmra.mxu0 %vm1131_vm3, %v1127_v18  ;;  %v1017_v18 = vld [vmem:[%s4609_s8 + $0x8] sm:$0xff] }
 0x252   : > { %3547 = vmatpush3.xpose.msk.msra.mxu1 %vm1131_vm3, %v1297_v21  ;;  %3543 = vmatprep.mubr.msk.f32.mxu0 %vm3970_vm0, %v3969_v1 }
 0x253   : > { %v1462_v22 = vpop.permute.xlu1 %1461  ;;  %3556 = vmatprep.subr.mxu1 %v3969_v1 }
 0x255   : > { %3549 = vmatmul.mubr.msk.f32.vlgmr.msra.gmra.mxu1 %vm1131_vm3, %v1295_v20  ;;  %v1460_v23 = vpop.permute.xlu0 %1459 }
 0x256   : > { %3557 = vmatpush3.xpose.msk.msra.mxu1 %vm1131_vm3, %v1462_v22  ;;  %3558 = vmatprep.mubr.msk.f32.mxu1 %vm3970_vm0, %v3969_v1 }
 0x257   : > { %3566 = vmatprep.subr.mxu1 %v3969_v1  ;;  %v1627_v24 = vpop.permute.xlu1 %1626 }
 0x259   : > { %3559 = vmatmul.mubr.msk.f32.vlgmr.msra.gmra.mxu1 %vm1131_vm3, %v1460_v23  ;;  %v1625_v25 = vpop.permute.xlu0 %1624 }
 0x25a   : > { %3567 = vmatpush3.xpose.msk.msra.mxu1 %vm1131_vm3, %v1627_v24  ;;  %3568 = vmatprep.mubr.msk.f32.mxu1 %vm3970_vm0, %v3969_v1 }
 0x25b   : > { %3576 = vmatprep.subr.mxu1 %v3969_v1 }
 0x25d   : > { %3569 = vmatmul.mubr.msk.f32.vlgmr.msra.gmra.mxu1 %vm1131_vm3, %v1625_v25 }
 0x25e   : > { %3584 = vmatprep.mubr.msk.f32.mxu1 %vm3970_vm0, %v3969_v1  ;;  %3577 = vmatpush3.msra.mxu1 %v1019_v11  ;;  %v3384_v11 = vld [vmem:[%s4616_s6] ss:$0 sm:$0xff] }
 0x25f   : > { %3578 = vmatprep.subr.mxu1 %v3969_v1 }
 0x260   : > { %3579 = vmatpush3.msra.mxu1 %v1018_v17 }
 0x261   : > { %3580 = vmatprep.subr.mxu1 %v3969_v1 }
 0x262   : > { %3581 = vmatpush3.msra.mxu1 %v1017_v18 }
 0x263   : > { %3582 = vmatprep.subr.mxu1 %v3969_v1 }
 0x264   : > { %3583 = vmatpush3.msra.mxu1 %v1016_v19 }
 0x265   : > { %3598 = vmatprep.subr.mxu1 %v3969_v1 }
 0x311   : > { %v1203_v26 = vpop.f32.mrf.mxu0 }
 0x312   : > { %v1207_v27 = vsel %vm1131_vm3, %v1203_v26, -inf }
 0x313   : > { %1208 = vmax.xlane.f32.xlu1 %v1207_v27  ;;  %v3540_v28 = vpop.f32.mrf.mxu0 }
 0x315   : > { %v1368_v29 = vpop.f32.mrf.mxu1 }
 0x316   : > { %v1372_v30 = vsel %vm1131_vm3, %v1368_v29, -inf }
 0x317   : > { %1373 = vmax.xlane.f32.xlu0 %v1372_v30  ;;  %v3550_v31 = vpop.f32.mrf.mxu1  ;;  %v3378_v30 = vld [vmem:[%s4039_s14] ss:$0 sm:$0xff] }
 0x319   : > { %v1533_v32 = vpop.f32.mrf.mxu1 }
 0x31a   : > { %v1537_v33 = vsel %vm1131_vm3, %v1533_v32, -inf }
 0x31b   : > { %1538 = vmax.xlane.f32.xlu0 %v1537_v33  ;;  %v3560_v34 = vpop.f32.mrf.mxu1 }
 0x31d   : > { %v1698_v35 = vpop.f32.mrf.mxu1 }
 0x31e   : > { %v1702_v36 = vsel %vm1131_vm3, %v1698_v35, -inf }
 0x31f   : > { %v3570_v37 = vpop.f32.mrf.mxu1  ;;  %1703 = vmax.xlane.f32.xlu1 %v1702_v36 }
 0x330   : > { %1383 = vrot.lane.b32.xlu1 %v4227_v16, %s4581_s1  ;;  %s4619_s1 = sld [smem:[#allocation14_spill]] }
 0x39c   : > { %v1209_v38 = vpop.xlane.xlu1 %1208 }
 0x39d   : > { %v1210_v39 = vsub.f32 %v1203_v26, %v1209_v38 }
 0x39f   : > { %v1211_v40 = vmul.f32 1.442695, %v1210_v39 }
 0x3a0   : > { %v1374_v41 = vpop.xlane.xlu0 %1373 }
 0x3a1   : > { %3837 = vpow2.f32 %v1211_v40  ;;  %v1375_v42 = vsub.f32 %v1368_v29, %v1374_v41  ;;  %v1024_v41 = vld [vmem:[%s4044_s19 + $0x18] sm:$0xff] }
 0x3a3   : > { %v1376_v43 = vmul.f32 1.442695, %v1375_v42  ;;  %v1023_v42 = vld [vmem:[%s4044_s19 + $0x10] sm:$0xff] }
 0x3a4   : > { %v1539_v53 = vpop.xlane.xlu0 %1538 }
 0x3a5   : > { %3839 = vpow2.f32 %v1376_v43  ;;  %v1540_v54 = vsub.f32 %v1533_v32, %v1539_v53  ;;  %v1021_v43 = vld [vmem:[%s4044_s19] sm:$0xff]  ;;  %v1032_v53 = vld [vmem:[%s4054_s30 + $0x30] sm:$0xff] }
 0x3a7   : > { %v1541_v55 = vmul.f32 1.442695, %v1540_v54  ;;  %v1031_v54 = vld [vmem:[%s4054_s30 + $0x28] sm:$0xff] }
 0x3a8   : > { %v1704_v44 = vpop.xlane.xlu1 %1703 }
 0x3a9   : > { %v1705_v45 = vsub.f32 %v1698_v35, %v1704_v44  ;;  %v1041_v44 = vld [vmem:[%s4054_s30 + $0x78] sm:$0xff] }
 0x3ab   : > { %v1706_v46 = vmul.f32 1.442695, %v1705_v45  ;;  %v1040_v45 = vld [vmem:[%s4054_s30 + $0x70] sm:$0xff] }
 0x3ac   : > { %v1384_v58 = vpop.permute.xlu1 %1383 }
 0x3ad   : > { %3841 = vpow2.f32 %v1706_v46  ;;  %v1039_v46 = vld [vmem:[%s4054_s30 + $0x68] sm:$0xff] }
 0x3ae   : > { %v3838_v47 = vpop.eup %3837  ;;  %3843 = vpow2.f32 %v1541_v55  ;;  %v1030_v55 = vld [vmem:[%s4054_s30 + $0x20] sm:$0xff] }
 0x3af   : > { %v1213_v48 = vsel %vm1131_vm3, %v3838_v47, 0.0 }
 0x3b0   : > { %1214 = vadd.xlane.f32.xlu0 %v1213_v48  ;;  %v1037_v48 = vld [vmem:[%s4054_s30 + $0x58] sm:$0xff] }
 0x3b2   : > { %v3840_v49 = vpop.eup %3839 }
 0x3b3   : > { %v1378_v50 = vsel %vm1131_vm3, %v3840_v49, 0.0 }
 0x3b4   : > { %1379 = vadd.xlane.f32.xlu1 %v1378_v50  ;;  %v1035_v50 = vld [vmem:[%s4054_s30 + $0x48] sm:$0xff] }
 0x3ba   : > { %v3842_v51 = vpop.eup %3841 }
 0x3bb   : > { %v1708_v52 = vsel %vm1131_vm3, %v3842_v51, 0.0  ;;  %v3844_v56 = vpop.eup %3843 }
 0x3bc   : > { %1709 = vadd.xlane.f32.xlu1 %v1708_v52  ;;  %v1543_v57 = vsel %vm1131_vm3, %v3844_v56, 0.0  ;;  %v1033_v52 = vld [vmem:[%s4054_s30 + $0x38] sm:$0xff] }
 0x3c6   : > { %1218 = vrot.lane.b32.xlu0 %v4227_v16, %s4582_s28  ;;  %s4620_s28 = sld [smem:[#allocation16_spill]] }
 0x3cd   : > { %1548 = vrot.lane.b32.xlu1 %v4227_v16, %s4576_s5  ;;  %s4578_s5 = smov 8  }
 0x3e5   : > { %1544 = vadd.xlane.f32.xlu0 %v1543_v57 }
 0x3fb   : > { %1713 = vrot.lane.b32.xlu0 %v4227_v16, %s4577_s3  ;;  %s4580_s3 = smov 16  }
 0x439   : > { %v1215_v59 = vpop.xlane.xlu0 %1214 }
 0x43a   : > { %3845 = vrcp.f32 %v1215_v59 }
 0x43d   : > { %v1219_v60 = vpop.permute.xlu0 %1218  ;;  %v1380_v61 = vpop.xlane.xlu1 %1379 }
 0x43e   : > { %3847 = vrcp.f32 %v1380_v61  ;;  %3542 = vmatpush3.msra.mxu0 %v1219_v60  ;;  %v3380_v61 = vld [vmem:[%s4615_s12] ss:$0 sm:$0xff] }
 0x43f   : > { %3551 = vmatprep.subr.mxu0 %v3969_v1 }
 0x445   : > { %v1710_v63 = vpop.xlane.xlu1 %1709 }
 0x447   : > { %v3846_v62 = vpop.eup %3845 }
 0x448   : > { %v1217_v0 = vmul.f32 %v3846_v62, %v3838_v47  ;;  %v1038_v47 = vld [vmem:[%s4054_s30 + $0x60] sm:$0xff] }
 0x449   : > { %v1549_v4 = vpop.permute.xlu1 %1548 }
 0x44a   : > { %3544 = vmatmul.mubr.msk.f32.vlgmr.msra.gmra.mxu0 %vm1131_vm3, %v1217_v0 }
 0x44b   : > { %v3848_v2 = vpop.eup %3847  ;;  %3552 = vmatpush3.msra.mxu0 %v1384_v58  ;;  %3553 = vmatprep.mubr.msk.f32.mxu0 %vm3970_vm0, %v3969_v1 }
 0x44c   : > { %3561 = vmatprep.subr.mxu0 %v3969_v1  ;;  %v1382_v3 = vmul.f32 %v3848_v2, %v3840_v49  ;;  %v1036_v49 = vld [vmem:[%s4054_s30 + $0x50] sm:$0xff] }
 0x44e   : > { %3554 = vmatmul.mubr.msk.f32.vlgmr.msra.gmra.mxu0 %vm1131_vm3, %v1382_v3  ;;  %v1028_v3 = vld [vmem:[%s4054_s30 + $0x10] sm:$0xff] }
 0x44f   : > { %3562 = vmatpush3.msra.mxu0 %v1549_v4  ;;  %3563 = vmatprep.mubr.msk.f32.mxu0 %vm3970_vm0, %v3969_v1  ;;  %v1027_v4 = vld [vmem:[%s4054_s30 + $0x8] sm:$0xff] }
 0x450   : > { %3571 = vmatprep.subr.mxu0 %v3969_v1 }
 0x46e   : > { %v1545_v5 = vpop.xlane.xlu0 %1544 }
 0x46f   : > { %3849 = vrcp.f32 %v1545_v5  ;;  %v1026_v5 = vld [vmem:[%s4054_s30] sm:$0xff] }
 0x470   : > { %3851 = vrcp.f32 %v1710_v63  ;;  %v3381_v63 = vld [vmem:[%s4069_s20] ss:$0 sm:$0xff] }
 0x472   : > { %v1714_v9 = vpop.permute.xlu0 %1713 }
 0x47c   : > { %v3850_v6 = vpop.eup %3849 }
 0x47d   : > { %v1547_v7 = vmul.f32 %v3850_v6, %v3844_v56  ;;  %v3852_v8 = vpop.eup %3851  ;;  %v1029_v56 = vld [vmem:[%s4054_s30 + $0x18] sm:$0xff]  ;;  %v3382_v6 = vld [vmem:[%s4049_s24] ss:$0 sm:$0xff] }
 0x47e   : > { %v1712_v10 = vmul.f32 %v3852_v8, %v3842_v51  ;;  %v1034_v51 = vld [vmem:[%s4054_s30 + $0x40] sm:$0xff] }
 0x47f   : > { %3564 = vmatmul.mubr.msk.f32.vlgmr.msra.gmra.mxu0 %vm1131_vm3, %v1547_v7 }
 0x480   : > { %3572 = vmatpush3.msra.mxu0 %v1714_v9  ;;  %3573 = vmatprep.mubr.msk.f32.mxu0 %vm3970_vm0, %v3969_v1 }
 0x481   : > { %3587 = vmatprep.subr.mxu0 %v3969_v1 }
 0x483   : > { %3574 = vmatmul.mubr.msk.f32.vlgmr.msra.gmra.mxu0 %vm1131_vm3, %v1712_v10 }
 0x484   : > { %3595 = vmatprep.mubr.msk.f32.mxu0 %vm3970_vm0, %v3969_v1  ;;  %3588 = vmatpush3.msra.mxu0 %v1024_v41 }
 0x485   : > { %3589 = vmatprep.subr.mxu0 %v3969_v1 }
 0x486   : > { %3590 = vmatpush3.msra.mxu0 %v1023_v42 }
 0x487   : > { %3591 = vmatprep.subr.mxu0 %v3969_v1 }
 0x50a   : > { %v1290_v12 = vpop.f32.mrf.mxu0 }
 0x50c   : > { %v3545_v14 = vpop.f32.mrf.mxu0 }
 0x50e   : > { %v1455_v15 = vpop.f32.mrf.mxu0 }
 0x50f   : > { %1790 = vrot.lane.b32.xlu1 %v1455_v15, %s4578_s5  ;;  %s4579_s5 = smov 24  }
 0x510   : > { %v3555_v16 = vpop.f32.mrf.mxu0 }
 0x53f   : > { %v1620_v20 = vpop.f32.mrf.mxu0 }
 0x540   : > { %1794 = vrot.lane.b32.xlu0 %v1620_v20, %s4580_s3  ;;  %s4618_s3 = sld [smem:[#allocation13_spill]] }
 0x541   : > { %v3565_v21 = vpop.f32.mrf.mxu0 }
 0x543   : > { %v1785_v22 = vpop.f32.mrf.mxu0 }
 0x544   : > { %1798 = vrot.lane.b32.xlu1 %v1785_v22, %s4579_s5  ;;  %s4617_s5 = sld [smem:[#allocation15_spill]] }
 0x545   : > { %v3575_v23 = vpop.f32.mrf.mxu0 }
 0x54a   : > { %v2100_v23 = vld [vmem:[%s4617_s5 + $0x18] sm:$0xff] }
 0x581   : > { %v1791_v24 = vpop.permute.xlu1 %1790 }
 0x582   : > { %v1801_v26 = vsel %vm1131_vm3, %v1290_v12, %v1791_v24  ;;  %v2099_v24 = vld [vmem:[%s4617_s5 + $0x10] sm:$0xff] }
 0x5b2   : > { %v1795_v25 = vpop.permute.xlu0 %1794 }
 0x5b3   : > { %v1802_v27 = vsel %vm935_vm1, %v1801_v26, %v1795_v25  ;;  %v2098_v25 = vld [vmem:[%s4617_s5 + $0x8] sm:$0xff]  ;;  %v2097_v26 = vld [vmem:[%s4617_s5] sm:$0xff] }
 0x5b6   : > { %v1799_v28 = vpop.permute.xlu1 %1798 }
 0x5b7   : > { %v1804_v29 = vsel %vm1803_vm4, %v1802_v27, %v1799_v28 }
 0x5b8   : > { %3585 = vmatmul.mubr.msk.f32.vlgmr.msra.gmra.mxu1 %vm1053_vm2, %v1804_v29 }
 0x5b9   : > { %3630 = vmatprep.mubr.msk.f32.mxu1 %vm3970_vm0, %v3969_v1  ;;  %3599 = vmatpush3.msra.mxu1 %v1041_v44 }
 0x5ba   : > { %3600 = vmatprep.subr.mxu1 %v3969_v1 }
 0x5bb   : > { %3601 = vmatpush3.msra.mxu1 %v1040_v45 }
 0x5bc   : > { %3602 = vmatprep.subr.mxu1 %v3969_v1 }
 0x5bd   : > { %3603 = vmatpush3.msra.mxu1 %v1039_v46 }
 0x5be   : > { %3604 = vmatprep.subr.mxu1 %v3969_v1 }
 0x5bf   : > { %3605 = vmatpush3.msra.mxu1 %v1038_v47 }
 0x5c0   : > { %3606 = vmatprep.subr.mxu1 %v3969_v1 }
 0x5c1   : > { %3607 = vmatpush3.msra.mxu1 %v1037_v48 }
 0x5c2   : > { %3608 = vmatprep.subr.mxu1 %v3969_v1 }
 0x5c3   : > { %3609 = vmatpush3.msra.mxu1 %v1036_v49 }
 0x5c4   : > { %3610 = vmatprep.subr.mxu1 %v3969_v1 }
 0x5c5   : > { %3611 = vmatpush3.msra.mxu1 %v1035_v50 }
 0x5c6   : > { %3612 = vmatprep.subr.mxu1 %v3969_v1 }
 0x5c7   : > { %3613 = vmatpush3.msra.mxu1 %v1034_v51 }
 0x5c8   : > { %3614 = vmatprep.subr.mxu1 %v3969_v1 }
 0x5c9   : > { %3615 = vmatpush3.msra.mxu1 %v1033_v52 }
 0x5ca   : > { %3616 = vmatprep.subr.mxu1 %v3969_v1 }
 0x5cb   : > { %3617 = vmatpush3.msra.mxu1 %v1032_v53 }
 0x5cc   : > { %3618 = vmatprep.subr.mxu1 %v3969_v1 }
 0x5cd   : > { %3619 = vmatpush3.msra.mxu1 %v1031_v54 }
 0x5ce   : > { %3620 = vmatprep.subr.mxu1 %v3969_v1 }
 0x5cf   : > { %3621 = vmatpush3.msra.mxu1 %v1030_v55 }
 0x5d0   : > { %3622 = vmatprep.subr.mxu1 %v3969_v1 }
 0x5d1   : > { %3623 = vmatpush3.msra.mxu1 %v1029_v56 }
 0x5d2   : > { %3624 = vmatprep.subr.mxu1 %v3969_v1 }
 0x5d3   : > { %3625 = vmatpush3.msra.mxu1 %v1028_v3 }
 0x5d4   : > { %3626 = vmatprep.subr.mxu1 %v3969_v1 }
 0x5d5   : > { %3627 = vmatpush3.msra.mxu1 %v1027_v4 }
 0x5d6   : > { %3628 = vmatprep.subr.mxu1 %v3969_v1 }
 0x5d7   : > { %3629 = vmatpush3.msra.mxu1 %v1026_v5 }
 0x5d8   : > { %3674 = vmatprep.subr.mxu1 %v3969_v1 }
 0x678   : > { %v1880_v31 = vpop.f32.mrf.mxu1 }
 0x679   : > { %v1881_v32 = vadd.f32 %v3378_v30, %v1880_v31  ;;  %v3385_v31 = vld [vmem:[%s4618_s3] ss:$0 sm:$0xff]  ;;  %s4622_s3 = smov 120  }
 0x67a   : > { %v3586_v33 = vpop.f32.mrf.mxu1 }
 0x67b   : > { %v1884_v34 = vadd.f32 %v1881_v32, %v4220_v13  ;;  %v1022_v13 = vld [vmem:[%s4044_s19 + $0x8] sm:$0xff]  ;;  %v3386_v33 = vld [vmem:[%s4619_s1] ss:$0 sm:$0xff]  ;;  %s4623_s1 = smov 64  }
 0x67c   : > { %3592 = vmatpush3.msra.mxu0 %v1022_v13 }
 0x67d   : > { %v1885_v35 = vsel %vm1053_vm2, %v1884_v34, 0.0  ;;  %3593 = vmatprep.subr.mxu0 %v3969_v1 }
 0x67e   : > { %1886 = vadd.xlane.f32.xlu0 %v1885_v35  ;;  %3594 = vmatpush3.msra.mxu0 %v1021_v43 }
 0x67f   : > { %3633 = vmatprep.subr.mxu0 %v3969_v1 }
 0x707   : > { %v1887_v36 = vpop.xlane.xlu0 %1886 }
 0x708   : > { %v1889_v37 = vmul.f32 0.03125, %v1887_v36  ;;  %v3387_v36 = vld [vmem:[%s4620_s28] ss:$0 sm:$0xff]  ;;  %s4626_s28 = smov 72  }
 0x70a   : > { %v1890_v38 = vsub.f32 %v1884_v34, %v1889_v37 }
 0x70c   : > { %v1891_v39 = vmul.f32 %v1890_v38, %v1890_v38 }
 0x70e   : > { %v1892_v40 = vsel %vm1053_vm2, %v1891_v39, 0.0 }
 0x70f   : > { %1893 = vadd.xlane.f32.xlu1 %v1892_v40 }
 0x798   : > { %v1894_v57 = vpop.xlane.xlu1 %1893 }
 0x799   : > { %v1895_v58 = vmul.f32 0.03125, %v1894_v57 }
 0x79b   : > { %v1896_v59 = vadd.f32 1e-05, %v1895_v58 }
 0x79d   : > { %3853 = vrsqrt.f32 %v1896_v59 }
 0x7aa   : > { %v3854_v60 = vpop.eup %3853 }
 0x7ab   : > { %v1898_v62 = vmul.f32 %v3854_v60, %v1890_v38 }
 0x7ad   : > { %v1905_v0 = vmul.f32 %v3380_v61, %v1898_v62 }
 0x7af   : > { %v1912_v2 = vadd.f32 %v3381_v63, %v1905_v0 }
 0x7b1   : > { %3596 = vmatmul.mubr.msk.f32.vlgmr.msra.gmra.mxu0 %vm1053_vm2, %v1912_v2 }
 0x7b2   : > { %3641 = vmatprep.mubr.msk.f32.mxu0 %vm3970_vm0, %v3969_v1  ;;  %3634 = vmatpush3.msra.mxu0 %v2100_v23 }
 0x7b3   : > { %3635 = vmatprep.subr.mxu0 %v3969_v1 }
 0x7b4   : > { %3636 = vmatpush3.msra.mxu0 %v2099_v24 }
 0x7b5   : > { %3637 = vmatprep.subr.mxu0 %v3969_v1 }
 0x7b6   : > { %3638 = vmatpush3.msra.mxu0 %v2098_v25 }
 0x7b7   : > { %3639 = vmatprep.subr.mxu0 %v3969_v1 }
 0x7b8   : > { %3640 = vmatpush3.msra.mxu0 %v2097_v26 }
 0x7b9   : > { %3644 = vmatprep.subr.mxu0 %v3969_v1 }
 0x871   : > { %v1988_v7 = vpop.f32.mrf.mxu0 }
 0x872   : > { %v1989_v8 = vadd.f32 %v3382_v6, %v1988_v7 }
 0x873   : > { %v3597_v9 = vpop.f32.mrf.mxu0 }
 0x874   : > { %v1992_v10 = vmax.f32 %v1989_v8, 0.0 }
 0x876   : > { %3631 = vmatmul.mubr.f32.vlgmr.msra.gmra.mxu1 %v1992_v10 }
 0x877   : > { %3676 = vmatprep.mubr.msk.f32.mxu1 %vm3970_vm0, %v3969_v1 }
 0x936   : > { %v2065_v12 = vpop.f32.mrf.mxu1 }
 0x937   : > { %v2066_v14 = vadd.f32 %v3384_v11, %v2065_v12 }
 0x938   : > { %v3632_v15 = vpop.f32.mrf.mxu1 }
 0x939   : > { %v2069_v16 = vadd.f32 %v2066_v14, %v1912_v2 }
 0x93b   : > { %v2070_v17 = vsel %vm1053_vm2, %v2069_v16, 0.0 }
 0x93c   : > { %2071 = vadd.xlane.f32.xlu0 %v2070_v17 }
 0x9c5   : > { %v2072_v18 = vpop.xlane.xlu0 %2071 }
 0x9c6   : > { %v2073_v19 = vmul.f32 0.03125, %v2072_v18 }
 0x9c8   : > { %v2074_v20 = vsub.f32 %v2069_v16, %v2073_v19 }
 0x9ca   : > { %v2075_v21 = vmul.f32 %v2074_v20, %v2074_v20 }
 0x9cc   : > { %v2076_v22 = vsel %vm1053_vm2, %v2075_v21, 0.0 }
 0x9cd   : > { %2077 = vadd.xlane.f32.xlu0 %v2076_v22 }
 0xa56   : > { %v2078_v27 = vpop.xlane.xlu0 %2077 }
 0xa57   : > { %v2079_v28 = vmul.f32 0.03125, %v2078_v27 }
 0xa59   : > { %v2080_v29 = vadd.f32 1e-05, %v2079_v28 }
 0xa5b   : > { %3855 = vrsqrt.f32 %v2080_v29 }
 0xa68   : > { %v3856_v30 = vpop.eup %3855 }
 0xa69   : > { %v2082_v32 = vmul.f32 %v3856_v30, %v2074_v20 }
 0xa6b   : > { %v2089_v34 = vmul.f32 %v3385_v31, %v2082_v32 }
 0xa6d   : > { %v4375_v35 = vadd.f32 %v3386_v33, %v2089_v34 }
 0xa6f   : > { %3642 = vmatmul.mubr.msk.f32.vlgmr.msra.gmra.mxu0 %vm1053_vm2, %v4375_v35 }
 0xa70   : > { %3646 = vmatprep.mubr.msk.f32.mxu0 %vm3970_vm0, %v3969_v1 }
 0xb2f   : > { %v2208_v37 = vpop.f32.mrf.mxu0 }
 0xb30   : > { %v4382_v38 = vadd.f32 %v3387_v36, %v2208_v37 }
 0xb31   : > { %v3643_v39 = vpop.f32.mrf.mxu0 }
 0xb32   : > { %2214 = vrot.lane.b32.xlu1 %v4382_v38, %s4621_s11  ;;  %v2212_v40 = vmul.f32 0.35355338, %v4382_v38  ;;  %s4624_s11 = smov 56  }
 0xb36   : > { %2380 = vrot.lane.b32.xlu1 %v4382_v38, %s3973_s23  ;;  %s4625_s23 = smov 112  }
 0xb3a   : > { %2378 = vrot.lane.b32.xlu1 %v2212_v40, %s4622_s3  ;;  %s4627_s3 = smov 80  }
 0xba4   : > { %v2215_v41 = vpop.permute.xlu1 %2214 }
 0xba5   : > { %3645 = vmatpush3.xpose.msk.msra.mxu0 %vm1131_vm3, %v2215_v41 }
 0xba6   : > { %3649 = vmatprep.subr.mxu0 %v3969_v1 }
 0xba8   : > { %3647 = vmatmul.mubr.msk.f32.vlgmr.msra.gmra.mxu0 %vm1131_vm3, %v2212_v40  ;;  %v2381_v52 = vpop.permute.xlu1 %2380 }
 0xba9   : > { %3651 = vmatprep.mubr.msk.f32.mxu0 %vm3970_vm0, %v3969_v1 }
 0xbac   : > { %v2379_v54 = vpop.permute.xlu1 %2378 }
 0xc68   : > { %v2287_v42 = vpop.f32.mrf.mxu0 }
 0xc69   : > { %v2291_v13 = vsel %vm1131_vm3, %v2287_v42, -inf }
 0xc6a   : > { %2292 = vmax.xlane.f32.xlu0 %v2291_v13  ;;  %v3648_v43 = vpop.f32.mrf.mxu0 }
 0xcf3   : > { %v2293_v44 = vpop.xlane.xlu0 %2292 }
 0xcf4   : > { %v2294_v45 = vsub.f32 %v2287_v42, %v2293_v44 }
 0xcf6   : > { %v2295_v46 = vmul.f32 1.442695, %v2294_v45 }
 0xcf8   : > { %3857 = vpow2.f32 %v2295_v46 }
 0xd05   : > { %v3858_v47 = vpop.eup %3857 }
 0xd06   : > { %v2297_v48 = vsel %vm1131_vm3, %v3858_v47, 0.0 }
 0xd07   : > { %2298 = vadd.xlane.f32.xlu0 %v2297_v48 }
 0xd1d   : > { %2302 = vrot.lane.b32.xlu0 %v4382_v38, %s4623_s1  ;;  %s4628_s1 = smov 104  }
 0xd90   : > { %v2299_v49 = vpop.xlane.xlu0 %2298 }
 0xd91   : > { %3859 = vrcp.f32 %v2299_v49 }
 0xd94   : > { %v2303_v50 = vpop.permute.xlu0 %2302 }
 0xd95   : > { %3650 = vmatpush3.msra.mxu0 %v2303_v50 }
 0xd96   : > { %3654 = vmatprep.subr.mxu0 %v3969_v1 }
 0xd9e   : > { %v3860_v51 = vpop.eup %3859 }
 0xd9f   : > { %v2301_v53 = vmul.f32 %v3860_v51, %v3858_v47 }
 0xda1   : > { %3652 = vmatmul.mubr.msk.f32.vlgmr.msra.gmra.mxu0 %vm1131_vm3, %v2301_v53 }
 0xda2   : > { %3655 = vmatpush3.xpose.msk.msra.mxu0 %vm1131_vm3, %v2381_v52  ;;  %3656 = vmatprep.mubr.msk.f32.mxu0 %vm3970_vm0, %v3969_v1 }
 0xda3   : > { %3659 = vmatprep.subr.mxu0 %v3969_v1 }
 0xda5   : > { %3657 = vmatmul.mubr.msk.f32.vlgmr.msra.gmra.mxu0 %vm1131_vm3, %v2379_v54 }
 0xda6   : > { %3661 = vmatprep.mubr.msk.f32.mxu0 %vm3970_vm0, %v3969_v1 }
 0xe61   : > { %v4408_v55 = vpop.f32.mrf.mxu0 }
 0xe63   : > { %v3653_v56 = vpop.f32.mrf.mxu0 }
 0xe65   : > { %v2452_v57 = vpop.f32.mrf.mxu0 }
 0xe66   : > { %v2456_v58 = vsel %vm1131_vm3, %v2452_v57, -inf }
 0xe67   : > { %2457 = vmax.xlane.f32.xlu1 %v2456_v58  ;;  %v3658_v59 = vpop.f32.mrf.mxu0 }
 0xe78   : > { %2467 = vrot.lane.b32.xlu1 %v4382_v38, %s4624_s11  ;;  %s4629_s11 = smov 40  }
 0xe7c   : > { %2543 = vrot.lane.b32.xlu1 %v2212_v40, %s4625_s23  ;;  %s4630_s23 = smov 8  }
 0xe80   : > { %2710 = vrot.lane.b32.xlu1 %v4382_v38, %s4626_s28  ;;  %s4631_s28 = smov 48  }
 0xef0   : > { %v2458_v60 = vpop.xlane.xlu1 %2457 }
 0xef1   : > { %v2459_v61 = vsub.f32 %v2452_v57, %v2458_v60 }
 0xef3   : > { %v2460_v62 = vmul.f32 1.442695, %v2459_v61 }
 0xef4   : > { %v2468_v63 = vpop.permute.xlu1 %2467 }
 0xef5   : > { %3861 = vpow2.f32 %v2460_v62  ;;  %3660 = vmatpush3.msra.mxu0 %v2468_v63 }
 0xef6   : > { %3664 = vmatprep.subr.mxu0 %v3969_v1 }
 0xef8   : > { %v2544_v0 = vpop.permute.xlu1 %2543 }
 0xefc   : > { %v2711_v2 = vpop.permute.xlu1 %2710 }
 0xefd   : > { %3675 = vmatpush3.xpose.msk.msra.mxu1 %vm1131_vm3, %v2711_v2 }
 0xefe   : > { %3684 = vmatprep.subr.mxu1 %v3969_v1 }
 0xf02   : > { %v3862_v3 = vpop.eup %3861 }
 0xf03   : > { %v2462_v4 = vsel %vm1131_vm3, %v3862_v3, 0.0 }
 0xf04   : > { %2463 = vadd.xlane.f32.xlu0 %v2462_v4 }
 0xf1a   : > { %2545 = vrot.lane.b32.xlu0 %v4382_v38, %s4627_s3  ;;  %s4632_s3 = sld [smem:[#allocation17_spill]] }
 0xf1e   : > { %2708 = vrot.lane.b32.xlu0 %v2212_v40, %s4628_s1  ;;  %s4633_s1 = sld [smem:[#allocation18_spill]] }
 0xf20   : > { %v2104_v39 = vld [vmem:[%s4632_s3 + $0x10] sm:$0xff]  ;;  %v2103_v40 = vld [vmem:[%s4632_s3 + $0x8] sm:$0xff]  ;;  %v2102_v41 = vld [vmem:[%s4632_s3] sm:$0xff] }
 0xf24   : > { %v3401_v51 = vld [vmem:[%s4633_s1] ss:$0 sm:$0xff]  ;;  %s4638_s1 = sld [smem:[#allocation23_spill]] }
 0xf8d   : > { %v2464_v5 = vpop.xlane.xlu0 %2463 }
 0xf8e   : > { %3863 = vrcp.f32 %v2464_v5 }
 0xf91   : > { %v2546_v6 = vpop.permute.xlu0 %2545 }
 0xf95   : > { %v2709_v7 = vpop.permute.xlu0 %2708 }
 0xf96   : > { %3677 = vmatmul.mubr.msk.f32.vlgmr.msra.gmra.mxu1 %vm1131_vm3, %v2709_v7 }
 0xf97   : > { %3692 = vmatprep.mubr.msk.f32.mxu1 %vm3970_vm0, %v3969_v1 }
 0xf9b   : > { %v3864_v8 = vpop.eup %3863 }
 0xf9c   : > { %v2466_v9 = vmul.f32 %v3864_v8, %v3862_v3 }
 0xf9e   : > { %3662 = vmatmul.mubr.msk.f32.vlgmr.msra.gmra.mxu0 %vm1131_vm3, %v2466_v9 }
 0xf9f   : > { %3665 = vmatpush3.xpose.msk.msra.mxu0 %vm1131_vm3, %v2546_v6  ;;  %3666 = vmatprep.mubr.msk.f32.mxu0 %vm3970_vm0, %v3969_v1 }
 0xfa0   : > { %3669 = vmatprep.subr.mxu0 %v3969_v1 }
 0xfa2   : > { %3667 = vmatmul.mubr.msk.f32.vlgmr.msra.gmra.mxu0 %vm1131_vm3, %v2544_v0 }
 0xfa3   : > { %3671 = vmatprep.mubr.msk.f32.mxu0 %vm3970_vm0, %v3969_v1 }
0x1056   : > { %v2782_v10 = vpop.f32.mrf.mxu1 }
0x1057   : > { %v2786_v11 = vsel %vm1131_vm3, %v2782_v10, -inf }
0x1058   : > { %2787 = vmax.xlane.f32.xlu0 %v2786_v11  ;;  %v3678_v12 = vpop.f32.mrf.mxu1 }
0x105e   : > { %v2539_v14 = vpop.f32.mrf.mxu0 }
0x1060   : > { %v3663_v15 = vpop.f32.mrf.mxu0 }
0x1062   : > { %v2617_v16 = vpop.f32.mrf.mxu0 }
0x1063   : > { %v2621_v17 = vsel %vm1131_vm3, %v2617_v16, -inf }
0x1064   : > { %2622 = vmax.xlane.f32.xlu1 %v2621_v17  ;;  %v3668_v18 = vpop.f32.mrf.mxu0 }
0x10e1   : > { %v2788_v19 = vpop.xlane.xlu0 %2787 }
0x10e2   : > { %v2789_v20 = vsub.f32 %v2782_v10, %v2788_v19 }
0x10e4   : > { %v2790_v21 = vmul.f32 1.442695, %v2789_v20  ;;  %v3403_v20 = vld [vmem:[%s4638_s1] ss:$0 sm:$0xff]  ;;  %s4641_s1 = sld [smem:[#allocation7_spill]] }
0x10e6   : > { %3865 = vpow2.f32 %v2790_v21 }
0x10ed   : > { %v2623_v22 = vpop.xlane.xlu1 %2622 }
0x10ee   : > { %v2624_v23 = vsub.f32 %v2617_v16, %v2623_v22  ;;  %v3404_v22 = vld [vmem:[%s4129_s21] ss:$0 sm:$0xff] }
0x10f0   : > { %v2625_v24 = vmul.f32 1.442695, %v2624_v23 }
0x10f2   : > { %3867 = vpow2.f32 %v2625_v24 }
0x10f3   : > { %v3866_v25 = vpop.eup %3865 }
0x10f4   : > { %v2792_v26 = vsel %vm1131_vm3, %v3866_v25, 0.0 }
0x10f5   : > { %2793 = vadd.xlane.f32.xlu1 %v2792_v26 }
0x10ff   : > { %v3868_v27 = vpop.eup %3867 }
0x1100   : > { %v2627_v28 = vsel %vm1131_vm3, %v3868_v27, 0.0 }
0x1101   : > { %2628 = vadd.xlane.f32.xlu0 %v2627_v28 }
0x1106   : > { %2797 = vrot.lane.b32.xlu1 %v4382_v38, %s4629_s11  ;;  %s4634_s11 = smov 16  }
0x110a   : > { %2874 = vrot.lane.b32.xlu1 %v2539_v14, %s4630_s23  ;;  %s4635_s23 = smov 24  }
0x1117   : > { %2632 = vrot.lane.b32.xlu0 %v4382_v38, %s4631_s28  ;;  %v2105_v38 = vld [vmem:[%s4632_s3 + $0x18] sm:$0xff]  ;;  %s4636_s28 = sld [smem:[#allocation19_spill]] }
0x1118   : > { %3685 = vmatpush3.msra.mxu1 %v2105_v38  ;;  %s4640_s3 = sld [smem:[#allocation22_spill]] }
0x1119   : > { %3686 = vmatprep.subr.mxu1 %v3969_v1 }
0x111a   : > { %3687 = vmatpush3.msra.mxu1 %v2104_v39 }
0x111b   : > { %3688 = vmatprep.subr.mxu1 %v3969_v1 }
0x111c   : > { %3689 = vmatpush3.msra.mxu1 %v2103_v40 }
0x111d   : > { %3690 = vmatprep.subr.mxu1 %v3969_v1  ;;  %v2110_v62 = vld [vmem:[%s4636_s28 + $0x18] sm:$0xff]  ;;  %v2109_v63 = vld [vmem:[%s4636_s28 + $0x10] sm:$0xff]  ;;  %v2107_v0 = vld [vmem:[%s4636_s28] sm:$0xff] }
0x111e   : > { %3691 = vmatpush3.msra.mxu1 %v2102_v41 }
0x111f   : > { %3706 = vmatprep.subr.mxu1 %v3969_v1 }
0x117e   : > { %v2794_v29 = vpop.xlane.xlu1 %2793 }
0x1182   : > { %v2798_v36 = vpop.permute.xlu1 %2797 }
0x1186   : > { %v2875_v45 = vpop.permute.xlu1 %2874 }
0x1187   : > { %v2885_v47 = vsel %vm1131_vm3, %v4408_v55, %v2875_v45  ;;  %v3181_v45 = vld [vmem:[%s4641_s1 + $0x10] sm:$0xff] }
0x118a   : > { %v2629_v30 = vpop.xlane.xlu0 %2628 }
0x118b   : > { %3869 = vrcp.f32 %v2629_v30 }
0x118c   : > { %3871 = vrcp.f32 %v2794_v29 }
0x118e   : > { %v2633_v31 = vpop.permute.xlu0 %2632 }
0x118f   : > { %3670 = vmatpush3.msra.mxu0 %v2633_v31 }
0x1190   : > { %3679 = vmatprep.subr.mxu0 %v3969_v1 }
0x1198   : > { %v3870_v32 = vpop.eup %3869 }
0x1199   : > { %v2631_v33 = vmul.f32 %v3870_v32, %v3868_v27  ;;  %v3872_v34 = vpop.eup %3871 }
0x119a   : > { %v2796_v37 = vmul.f32 %v3872_v34, %v3866_v25 }
0x119b   : > { %3672 = vmatmul.mubr.msk.f32.vlgmr.msra.gmra.mxu0 %vm1131_vm3, %v2631_v33  ;;  %v3407_v33 = vld [vmem:[%s4640_s3] ss:$0 sm:$0xff]  ;;  %s4643_s3 = sld [smem:[#allocation8_spill]] }
0x119c   : > { %3680 = vmatpush3.msra.mxu0 %v2798_v36  ;;  %3681 = vmatprep.mubr.msk.f32.mxu0 %vm3970_vm0, %v3969_v1 }
0x119d   : > { %3695 = vmatprep.subr.mxu0 %v3969_v1 }
0x119f   : > { %3682 = vmatmul.mubr.msk.f32.vlgmr.msra.gmra.mxu0 %vm1131_vm3, %v2796_v37 }
0x11a0   : > { %3703 = vmatprep.mubr.msk.f32.mxu0 %vm3970_vm0, %v3969_v1  ;;  %3696 = vmatpush3.msra.mxu0 %v2110_v62 }
0x11a1   : > { %3697 = vmatprep.subr.mxu0 %v3969_v1 }
0x11a2   : > { %3698 = vmatpush3.msra.mxu0 %v2109_v63 }
0x11a3   : > { %3699 = vmatprep.subr.mxu0 %v3969_v1 }
0x125b   : > { %v2704_v42 = vpop.f32.mrf.mxu0 }
0x125c   : > { %2878 = vrot.lane.b32.xlu0 %v2704_v42, %s4634_s11  ;;  %s4637_s11 = sld [smem:[#allocation21_spill]] }
0x125d   : > { %v3673_v13 = vpop.f32.mrf.mxu0 }
0x125f   : > { %v2869_v43 = vpop.f32.mrf.mxu0 }
0x1260   : > { %2882 = vrot.lane.b32.xlu1 %v2869_v43, %s4635_s23  ;;  %s4639_s23 = sld [smem:[#allocation20_spill]] }
0x1261   : > { %v3683_v44 = vpop.f32.mrf.mxu0 }
0x1262   : > { %v2127_v2 = vld [vmem:[%s4637_s11 + $0x78] sm:$0xff]  ;;  %v2126_v3 = vld [vmem:[%s4637_s11 + $0x70] sm:$0xff]  ;;  %v2125_v4 = vld [vmem:[%s4637_s11 + $0x68] sm:$0xff] }
0x1263   : > { %v2124_v5 = vld [vmem:[%s4637_s11 + $0x60] sm:$0xff]  ;;  %v2123_v6 = vld [vmem:[%s4637_s11 + $0x58] sm:$0xff]  ;;  %v2122_v7 = vld [vmem:[%s4637_s11 + $0x50] sm:$0xff] }
0x1264   : > { %v2121_v8 = vld [vmem:[%s4637_s11 + $0x48] sm:$0xff]  ;;  %v2120_v9 = vld [vmem:[%s4637_s11 + $0x40] sm:$0xff]  ;;  %v2119_v10 = vld [vmem:[%s4637_s11 + $0x38] sm:$0xff] }
0x1265   : > { %v2118_v11 = vld [vmem:[%s4637_s11 + $0x30] sm:$0xff]  ;;  %v2117_v12 = vld [vmem:[%s4637_s11 + $0x28] sm:$0xff]  ;;  %v2116_v14 = vld [vmem:[%s4637_s11 + $0x20] sm:$0xff] }
0x1266   : > { %v2115_v15 = vld [vmem:[%s4637_s11 + $0x18] sm:$0xff]  ;;  %v2114_v25 = vld [vmem:[%s4637_s11 + $0x10] sm:$0xff]  ;;  %v2113_v26 = vld [vmem:[%s4637_s11 + $0x8] sm:$0xff] }
0x1267   : > { %v2112_v27 = vld [vmem:[%s4637_s11] sm:$0xff]  ;;  %v3182_v44 = vld [vmem:[%s4641_s1 + $0x18] sm:$0xff]  ;;  %s3985_s11 = smov [#allocation2]  }
0x1268   : > { %v3405_v28 = vld [vmem:[%s4639_s23] ss:$0 sm:$0xff]  ;;  %s919_s23 = sand.u32 1, %s3929_s16   ;;  %s3881_s12 = sshll.u32 %s3985_s11, 4  ;;  %s3882_s12 = int_to_ptr.vmem [resolvable:$false] %s3881_s12 }
0x1269   : > { %s920_s5 = scalar_lea.vmem [#allocation2], %s919_s23  ;;  %s3260_s9 = scalar_lea.sflag [#allocation3], %s919_s23 }
0x126a   : > { %s3272_s6 = sshll.u32 %s920_s5, 4  ;;  %s3273_s6 = int_to_ptr.vmem [resolvable:$true] %s3272_s6 }
0x126b   : > { %p3884_p0 = scmp.lt.s32.totalorder %s3273_s6, %s3882_s12 }
0x12ce   : > { %v2879_v46 = vpop.permute.xlu0 %2878 }
0x12cf   : > { %v2886_v48 = vsel %vm935_vm1, %v2885_v47, %v2879_v46  ;;  %v3180_v46 = vld [vmem:[%s4641_s1 + $0x8] sm:$0xff]  ;;  %v3179_v47 = vld [vmem:[%s4641_s1] sm:$0xff]  ;;  %s3411_s1 = sshll.u32 %s4167_s0, 4 }
0x12d0   : > { %s4534_s8 = scalar_lea.hbm %s4144_s25, %s3411_s1 }
0x12d2   : > { %v2883_v49 = vpop.permute.xlu1 %2882 }
0x12d3   : > { %v2887_v50 = vsel %vm1803_vm4, %v2886_v48, %v2883_v49 }
0x12d4   : > { %3693 = vmatmul.mubr.msk.f32.vlgmr.msra.gmra.mxu1 %vm1053_vm2, %v2887_v50 }
0x12d5   : > { %3738 = vmatprep.mubr.msk.f32.mxu1 %vm3970_vm0, %v3969_v1  ;;  %3707 = vmatpush3.msra.mxu1 %v2127_v2 }
0x12d6   : > { %3708 = vmatprep.subr.mxu1 %v3969_v1 }
0x12d7   : > { %3709 = vmatpush3.msra.mxu1 %v2126_v3 }
0x12d8   : > { %3710 = vmatprep.subr.mxu1 %v3969_v1 }
0x12d9   : > { %3711 = vmatpush3.msra.mxu1 %v2125_v4 }
0x12da   : > { %3712 = vmatprep.subr.mxu1 %v3969_v1 }
0x12db   : > { %3713 = vmatpush3.msra.mxu1 %v2124_v5 }
0x12dc   : > { %3714 = vmatprep.subr.mxu1 %v3969_v1 }
0x12dd   : > { %3715 = vmatpush3.msra.mxu1 %v2123_v6 }
0x12de   : > { %3716 = vmatprep.subr.mxu1 %v3969_v1 }
0x12df   : > { %3717 = vmatpush3.msra.mxu1 %v2122_v7 }
0x12e0   : > { %3718 = vmatprep.subr.mxu1 %v3969_v1 }
0x12e1   : > { %3719 = vmatpush3.msra.mxu1 %v2121_v8 }
0x12e2   : > { %3720 = vmatprep.subr.mxu1 %v3969_v1 }
0x12e3   : > { %3721 = vmatpush3.msra.mxu1 %v2120_v9 }
0x12e4   : > { %3722 = vmatprep.subr.mxu1 %v3969_v1 }
0x12e5   : > { %3723 = vmatpush3.msra.mxu1 %v2119_v10 }
0x12e6   : > { %3724 = vmatprep.subr.mxu1 %v3969_v1 }
0x12e7   : > { %3725 = vmatpush3.msra.mxu1 %v2118_v11 }
0x12e8   : > { %3726 = vmatprep.subr.mxu1 %v3969_v1 }
0x12e9   : > { %3727 = vmatpush3.msra.mxu1 %v2117_v12 }
0x12ea   : > { %3728 = vmatprep.subr.mxu1 %v3969_v1 }
0x12eb   : > { %3729 = vmatpush3.msra.mxu1 %v2116_v14 }
0x12ec   : > { %3730 = vmatprep.subr.mxu1 %v3969_v1 }
0x12ed   : > { %3731 = vmatpush3.msra.mxu1 %v2115_v15 }
0x12ee   : > { %3732 = vmatprep.subr.mxu1 %v3969_v1 }
0x12ef   : > { %3733 = vmatpush3.msra.mxu1 %v2114_v25 }
0x12f0   : > { %3734 = vmatprep.subr.mxu1 %v3969_v1 }
0x12f1   : > { %3735 = vmatpush3.msra.mxu1 %v2113_v26 }
0x12f2   : > { %3736 = vmatprep.subr.mxu1 %v3969_v1 }
0x12f3   : > { %3737 = vmatpush3.msra.mxu1 %v2112_v27 }
0x1394   : > { %v2963_v52 = vpop.f32.mrf.mxu1 }
0x1395   : > { %v2964_v53 = vadd.f32 %v3401_v51, %v2963_v52  ;;  %v3408_v52 = vld [vmem:[%s4134_s27] ss:$0 sm:$0xff] }
0x1396   : > { %v3694_v54 = vpop.f32.mrf.mxu1 }
0x1397   : > { %v2967_v56 = vadd.f32 %v2964_v53, %v4375_v35  ;;  %v2108_v35 = vld [vmem:[%s4636_s28 + $0x8] sm:$0xff]  ;;  %v3409_v54 = vld [vmem:[%s4642_s4] ss:$0 sm:$0xff]  ;;  %s3877_s4 = scalar_lea.vmem %s3273_s6, 16 }
0x1398   : > { %3700 = vmatpush3.msra.mxu0 %v2108_v35  ;;  %p3878_p11 = scmp.ne.s32.totalorder %s3273_s6, %s3877_s4 }
0x1399   : > { %v2968_v55 = vsel %vm1053_vm2, %v2967_v56, 0.0  ;;  %3701 = vmatprep.subr.mxu0 %v3969_v1 }
0x139a   : > { %2969 = vadd.xlane.f32.xlu0 %v2968_v55  ;;  %3702 = vmatpush3.msra.mxu0 %v2107_v0  ;;  %p3879_p12 = pnand %p3878_p11, %p4184_p5 }
0x139b   : > { %3741 = vmatprep.subr.mxu0 %v3969_v1 }
0x139c   : > { %p3880_p13 = pneg %p3879_p12 }
0x1423   : > { %v2970_v57 = vpop.xlane.xlu0 %2969 }
0x1424   : > { %v2971_v58 = vmul.f32 0.03125, %v2970_v57 }
0x1426   : > { %v2972_v59 = vsub.f32 %v2967_v56, %v2971_v58  ;;  %v3183_v58 = vld [vmem:[%s4643_s3] sm:$0x1]  ;;  %s3883_s3 = scalar_lea.vmem %s3882_s12, 32 }
0x1427   : > { %p3885_p1 = scmp.lt.s32.totalorder %s3883_s3, %s3877_s4 }
0x1428   : > { %v2973_v60 = vmul.f32 %v2972_v59, %v2972_v59 }
0x1429   : > { %p3886_p2 = por %p3885_p1, %p3884_p0 }
0x142a   : > { %v2974_v61 = vsel %vm1053_vm2, %v2973_v60, 0.0 }
0x142b   : > { %2975 = vadd.xlane.f32.xlu1 %v2974_v61  ;;  %p3887_p3 = pnand %p3886_p2, %p3880_p13 }
0x14b4   : > { %v2976_v16 = vpop.xlane.xlu1 %2975 }
0x14b5   : > { %v2977_v17 = vmul.f32 0.03125, %v2976_v16 }
0x14b7   : > { %v2978_v18 = vadd.f32 1e-05, %v2977_v17 }
0x14b9   : > { %3873 = vrsqrt.f32 %v2978_v18 }
0x14c6   : > { %v3874_v19 = vpop.eup %3873 }
0x14c7   : > { %v2980_v21 = vmul.f32 %v3874_v19, %v2972_v59 }
0x14c9   : > { %v2987_v23 = vmul.f32 %v3403_v20, %v2980_v21 }
0x14cb   : > { %v2994_v24 = vadd.f32 %v3404_v22, %v2987_v23 }
0x14cd   : > { %3704 = vmatmul.mubr.msk.f32.vlgmr.msra.gmra.mxu0 %vm1053_vm2, %v2994_v24 }
0x14ce   : > { %3749 = vmatprep.mubr.msk.f32.mxu0 %vm3970_vm0, %v3969_v1  ;;  %3742 = vmatpush3.msra.mxu0 %v3182_v44 }
0x14cf   : > { %3743 = vmatprep.subr.mxu0 %v3969_v1 }
0x14d0   : > { %3744 = vmatpush3.msra.mxu0 %v3181_v45 }
0x14d1   : > { %3745 = vmatprep.subr.mxu0 %v3969_v1 }
0x14d2   : > { %3746 = vmatpush3.msra.mxu0 %v3180_v46 }
0x14d3   : > { %3747 = vmatprep.subr.mxu0 %v3969_v1 }
0x14d4   : > { %3748 = vmatpush3.msra.mxu0 %v3179_v47 }
0x158d   : > { %v3070_v29 = vpop.f32.mrf.mxu0 }
0x158e   : > { %v3071_v30 = vadd.f32 %v3405_v28, %v3070_v29 }
0x158f   : > { %v3705_v31 = vpop.f32.mrf.mxu0 }
0x1590   : > { %v3074_v32 = vmax.f32 %v3071_v30, 0.0 }
0x1592   : > { %3739 = vmatmul.mubr.f32.vlgmr.msra.gmra.mxu1 %v3074_v32 }
0x1652   : > { %v3147_v34 = vpop.f32.mrf.mxu1 }
0x1653   : > { %v3148_v36 = vadd.f32 %v3407_v33, %v3147_v34 }
0x1654   : > { %v3740_v37 = vpop.f32.mrf.mxu1 }
0x1655   : > { %v3151_v38 = vadd.f32 %v3148_v36, %v2994_v24 }
0x1657   : > { %v3152_v39 = vsel %vm1053_vm2, %v3151_v38, 0.0 }
0x1658   : > { %3153 = vadd.xlane.f32.xlu0 %v3152_v39 }
0x16e1   : > { %v3154_v40 = vpop.xlane.xlu0 %3153 }
0x16e2   : > { %v3155_v41 = vmul.f32 0.03125, %v3154_v40 }
0x16e4   : > { %v3156_v42 = vsub.f32 %v3151_v38, %v3155_v41 }
0x16e6   : > { %v3157_v13 = vmul.f32 %v3156_v42, %v3156_v42 }
0x16e8   : > { %v3158_v43 = vsel %vm1053_vm2, %v3157_v13, 0.0 }
0x16e9   : > { %3159 = vadd.xlane.f32.xlu0 %v3158_v43 }
0x1772   : > { %v3160_v48 = vpop.xlane.xlu0 %3159 }
0x1773   : > { %v3161_v49 = vmul.f32 0.03125, %v3160_v48 }
0x1775   : > { %v3162_v50 = vadd.f32 1e-05, %v3161_v49 }
0x1777   : > { %3875 = vrsqrt.f32 %v3162_v50 }
0x1784   : > { %v3876_v51 = vpop.eup %3875 }
0x1785   : > { %v3164_v53 = vmul.f32 %v3876_v51, %v3156_v42 }
0x1787   : > { %v3171_v56 = vmul.f32 %v3408_v52, %v3164_v53 }
0x1789   : > { %v3178_v55 = vadd.f32 %v3409_v54, %v3171_v56 }
0x178b   : > { %v3185_v57 = vrot.slane %v3178_v55, 7 }
0x178d   : > { %3750 = vmatmul.mubr.msk.f32.vlgmr.msra.gmra.mxu0 %vm1053_vm2, %v3185_v57 }
0x184d   : > { %v3254_v1 = vpop.f32.mrf.mxu0 }
0x184e   : > { %v3255_v59 = vadd.f32 %v3254_v1, %v3183_v58 }
0x184f   : > { %v3751_v60 = vpop.f32.mrf.mxu0 }
0x1850   : > { %3258 = vst [vmem:[%s920_s5] sm:$0x1] %v3255_v59 }
0x1851   : > { %3890 = shalt.err (!%p3887_p3)
}
0x1852   : > { %s3891_s5 = scalar_lea.hbm %s4534_s8, 16  ;;  %s3895_s0 = scalar_lea.hbm %s4144_s25, 32 }
0x1853   : > { %p3892_p4 = scmp.ne.s32.totalorder %s4534_s8, %s3891_s5  ;;  %p3896_p9 = scmp.lt.s32.totalorder %s4534_s8, %s4144_s25 }
0x1854   : > { %p3897_p10 = scmp.lt.s32.totalorder %s3895_s0, %s3891_s5 }
0x1855   : > { %p3893_p7 = pnand %p3892_p4, %p4184_p5 }
0x1856   : > { %p3898_p11 = por %p3897_p10, %p3896_p9 }
0x1857   : > { %p3894_p8 = pneg %p3893_p7 }
0x1859   : > { %p3899_p12 = pnand %p3898_p11, %p3894_p8 }
0x185b   : > { %3902 = shalt.err (!%p3899_p12)
}
0x185c   : > { %3752 = dma.vmem_to_hbm [thread:$0]  (%p4184_p5), %s3273_s6, 16, %s4534_s8, %s3260_s9  }
0x185d PF: > { %p3758_p13 = scmp.ge.s32.totalorder %s3937_s22, 2  ;;  %s3284_s12 = sand.u32 1, %s3925_s15  }
0x185e   : > { %s3285_s4 = scalar_lea.sflag [#allocation3], %s3284_s12 }
0x185f   : > { %p3755_p0 = pnand %p3758_p13, %p4188_p6 }
0x1861   : > { %p3756_p1 = pneg %p3755_p0 }
0x1863   : > { %3920 = dma.done.wait (%p3756_p1), %s3285_s4, 16  }
0x1864   : > { %3922 = vsyncadd (%p3756_p1), %s3285_s4, 4294967280  ;;  %p71_p2 = scmp.ge.s32.totalorder %s4171_s26, 4   ;;  %s4644_s15 = smov %s3929_s16 }
0x1865   : > { %s4645_s16 = smov %s3933_s18  ;;  %s4646_s18 = smov %s4182_s2 }
0x1866   : > { %s4647_s22 = smov %s4171_s26  ;;  %73 = sbr.rel (!%p71_p2) target bundleno = 61 (0x3d), region = 205 }
0x186b   :  { %3289 = vsyncpa [#allocation3], 1 }
0x186c   :  { %3291 = vsyncpa [#allocation3 + $0x1], 1 }

</bundles_post_ra>
